<compile_context>
chip_gen: v7x
topology: tpu7x:2x2x1
jax: 0.10.0
libtpu: 0.0.40
codegen_flags: <defaults>
</compile_context>

<pallas_src>
import math

import jax
import jax.numpy as jnp
from jax import lax
from jax.experimental import pallas as pl
from jax.experimental.pallas import tpu as pltpu

_PI = math.pi
_PI_2 = math.pi / 2.0
_LANES = 128

# Packed input channel layout, shape (B, 24, R_pad//128, 128):
#   0- 2 : N_r        3- 5 : CA_r       6- 8 : C_r       9-11 : O_r
#  12-14 : N_{r+1}   15-17 : CA_{r+1}  18-20 : C_{r-1}
#     21 : mask_r    22 : same_chain(r-1, r)   23 : same_chain(r, r+1)
_NUM_CH = 24


def _cdiv(a, b):
    return -(-a // b)


def _acos(x):
    """float32 arccos(x), x in [-1,1]. Cephes acosf range reduction + asinf
    polynomial; uses only mul/add/sqrt/select (|err| ~ 1e-6)."""
    a = jnp.abs(x)
    big = a > 0.5
    z = jnp.where(big, 0.5 * (1.0 - a), a * a)
    t = jnp.where(big, jnp.sqrt(z), a)
    p = 4.2163199048e-2
    p = p * z + 2.4181311049e-2
    p = p * z + 4.5470025998e-2
    p = p * z + 7.4953002686e-2
    p = p * z + 1.6666752422e-1
    r = t * z * p + t                      # ~ asin(t), t in [0, ~0.707]
    acos_abs = jnp.where(big, 2.0 * r, _PI_2 - r)
    return jnp.where(x < 0.0, _PI - acos_abs, acos_abs)


def _make_kernel(rows_tile, distance_eps):
    eps = float(distance_eps)
    n_sub = rows_tile // 8
    # Unroll fully when short; x2 otherwise (keeps live vregs under the 64-file).
    unroll = True if n_sub <= 4 else 2

    def kernel(x_ref, d_ref, a_ref, l_ref):
        # ---- 3-vector helpers over (8,128) planes ----
        def sub3(a, b):
            return (a[0] - b[0], a[1] - b[1], a[2] - b[2])

        def dot3(a, b):
            return a[0] * b[0] + a[1] * b[1] + a[2] * b[2]

        def cross3(a, b):
            return (a[1] * b[2] - a[2] * b[1],
                    a[2] * b[0] - a[0] * b[2],
                    a[0] * b[1] - a[1] * b[0])

        def scale3(v, s):
            return (v[0] * s, v[1] * s, v[2] * s)

        def unit(v):
            return scale3(v, lax.rsqrt(dot3(v, v) + eps))

        def unit_and_len(v):
            # One shared rsqrt: inv = rsqrt(|v|^2+eps); length = (|v|^2+eps)*inv.
            s = dot3(v, v) + eps
            inv = lax.rsqrt(s)
            return scale3(v, inv), s * inv

        def clamp1(x):
            return jnp.minimum(jnp.maximum(x, -1.0), 1.0)

        def signed_acos(cos_d, s):
            # sign(s) * acos(cos_d); s == 0 only on masked rows (zeroed anyway).
            ac = _acos(clamp1(cos_d))
            return jnp.where(s < 0.0, -ac, ac)

        def body(step, carry):
            row = pl.multiple_of(step * 8, 8)
            sl = pl.ds(row, 8)

            def ch(c):
                return x_ref[0, c, sl, :]          # dense (8,128) plane

            def vec(c0):
                return (ch(c0), ch(c0 + 1), ch(c0 + 2))

            N, CA, Cc, O = vec(0), vec(3), vec(6), vec(9)
            Nn, CAn, Cp = vec(12), vec(15), vec(18)
            m = ch(21)
            m_prev = m * ch(22)
            m_next = m * ch(23)

            # --- shared bond directions (one rsqrt each; lengths ride along) ---
            u_N_CA, L_N_CA = unit_and_len(sub3(CA, N))     # N  -> CA
            u_CA_C, L_CA_C = unit_and_len(sub3(Cc, CA))    # CA -> C
            u_C_Nn, L_C_Nn = unit_and_len(sub3(Nn, Cc))    # C  -> N(next)
            u_C_O,  L_C_O  = unit_and_len(sub3(O, Cc))     # C  -> O
            u_Nn_CAn = unit(sub3(CAn, Nn))                 # N(next) -> CA(next)
            u_Cp_N   = unit(sub3(N, Cp))                   # C(prev) -> N
            u_Nn_CA  = unit(sub3(CA, Nn))                  # N(next) -> CA

            # --- shared plane normals ---
            n_NCaC   = unit(cross3(u_N_CA, u_CA_C))        # plane N-CA-C
            n_CaCNn  = unit(cross3(u_CA_C, u_C_Nn))        # plane CA-C-Nn
            n_CpNCa  = unit(cross3(u_Cp_N, u_N_CA))        # plane Cp-N-CA
            n_CNnCAn = unit(cross3(u_C_Nn, u_Nn_CAn))      # plane C-Nn-CAn
            n_NnCaC  = unit(cross3(u_Nn_CA, u_CA_C))       # plane Nn-CA-C
            n_CaCO   = unit(cross3(u_CA_C, u_C_O))         # plane CA-C-O

            # bond lengths: [N-CA, CA-C, C-N(next), C=O]
            l_ref[0, 0, sl, :] = m * L_N_CA
            l_ref[0, 1, sl, :] = m * L_CA_C
            l_ref[0, 2, sl, :] = m_next * L_C_Nn
            l_ref[0, 3, sl, :] = m * L_C_O

            # bond angles: module computes pi - acos(dot(u_ji, u_jk)); with the
            # shared forward directions the flip gives pi - acos(-x) = acos(x).
            a_ref[0, 0, sl, :] = m * _acos(clamp1(dot3(u_N_CA, u_CA_C)))
            a_ref[0, 1, sl, :] = m_next * _acos(clamp1(dot3(u_CA_C, u_C_Nn)))
            a_ref[0, 2, sl, :] = m_next * _acos(clamp1(dot3(u_C_Nn, u_Nn_CAn)))
            a_ref[0, 3, sl, :] = m * _acos(clamp1(dot3(u_CA_C, u_C_O)))

            # dihedrals: [phi, psi, omega, O-dihedral]
            d_ref[0, 0, sl, :] = m_prev * signed_acos(dot3(n_CpNCa, n_NCaC),
                                                      dot3(u_Cp_N, n_NCaC))
            d_ref[0, 1, sl, :] = m_next * signed_acos(dot3(n_NCaC, n_CaCNn),
                                                      dot3(u_N_CA, n_CaCNn))
            d_ref[0, 2, sl, :] = m_next * signed_acos(dot3(n_CaCNn, n_CNnCAn),
                                                      dot3(u_CA_C, n_CNnCAn))
            d_ref[0, 3, sl, :] = m_next * signed_acos(dot3(n_NnCaC, n_CaCO),
                                                      dot3(u_Nn_CA, n_CaCO))
            return carry

        lax.fori_loop(0, n_sub, body, 0, unroll=unroll)

    return kernel


def _tiling(R, B):
    rows_needed = _cdiv(R, _LANES)               # 128-residue sublane rows
    # Target ~128 sublane rows (~16K residues, ~2.4 MB moved) per grid step.
    n_tiles = max(1, _cdiv(rows_needed, 128))
    # v7x has 2 TensorCores: guarantee >= 2 parallel grid steps when possible.
    if B * n_tiles < 2 and rows_needed >= 16:
        n_tiles = 2
    rows_tile = _cdiv(_cdiv(rows_needed, n_tiles), 8) * 8
    return rows_tile, n_tiles, n_tiles * rows_tile * _LANES


def _chain_masks(C):
    Ci = C.astype(jnp.int32)
    valid = Ci > 0
    mask = valid.astype(jnp.float32)
    Cm = jnp.where(valid, Ci, 0)
    same = (Cm[:, :-1] == Cm[:, 1:]).astype(jnp.float32)
    zero = jnp.zeros((C.shape[0], 1), jnp.float32)
    same_prev = jnp.concatenate([zero, same], axis=1)   # 0 at r = 0
    same_next = jnp.concatenate([same, zero], axis=1)   # 0 at r = R-1
    return mask, same_prev, same_next


def _pack_inputs(X, mask, same_prev, same_next, R_pad):
    B, R = X.shape[0], X.shape[1]
    coords = jnp.transpose(X.astype(jnp.float32), (0, 2, 3, 1)).reshape(B, 12, R)
    zero3 = jnp.zeros((B, 3, 1), jnp.float32)
    n_next = jnp.concatenate([coords[:, 0:3, 1:], zero3], axis=2)
    ca_next = jnp.concatenate([coords[:, 3:6, 1:], zero3], axis=2)
    c_prev = jnp.concatenate([zero3, coords[:, 6:9, :-1]], axis=2)
    packed = jnp.concatenate(
        [coords, n_next, ca_next, c_prev,
         mask[:, None, :], same_prev[:, None, :], same_next[:, None, :]], axis=1)
    packed = jnp.pad(packed, ((0, 0), (0, 0), (0, R_pad - R)))
    return packed.reshape(B, _NUM_CH, R_pad // _LANES, _LANES)


def internal_coords(X, C, distance_eps=1e-3, return_masks=False):
    """Pallas-TPU InternalCoords forward. X: (B,R,4,3), C: (B,R) -> D, A, L (B,R,4)."""
    B, R, n_atoms, three = X.shape
    assert n_atoms == 4 and three == 3
    rows_tile, n_tiles, R_pad = _tiling(R, B)
    rows_total = R_pad // _LANES
    mask, same_prev, same_next = _chain_masks(C)
    packed = _pack_inputs(X, mask, same_prev, same_next, R_pad)

    out_sds = jax.ShapeDtypeStruct((B, 4, rows_total, _LANES), jnp.float32)
    out_spec = pl.BlockSpec((1, 4, rows_tile, _LANES), lambda b, t: (b, 0, t, 0))
    D, A, L = pl.pallas_call(
        _make_kernel(rows_tile, distance_eps),
        out_shape=(out_sds, out_sds, out_sds),
        grid_spec=pltpu.PrefetchScalarGridSpec(
            num_scalar_prefetch=0,
            grid=(B, n_tiles),
            in_specs=[pl.BlockSpec((1, _NUM_CH, rows_tile, _LANES),
                                   lambda b, t: (b, 0, t, 0))],
            out_specs=(out_spec, out_spec, out_spec),
        ),
        compiler_params=pltpu.CompilerParams(
            dimension_semantics=("parallel", "parallel")),
    )(packed)

    def unpack(y):
        return jnp.transpose(y.reshape(B, 4, R_pad)[:, :, :R], (0, 2, 1))

    D, A, L = unpack(D), unpack(A), unpack(L)
    if not return_masks:
        return D, A, L
    m, sp, sn = mask, same_prev, same_next
    mask_D = jnp.stack([m * sp, m * sn, m * sn, m * sn], axis=-1)
    mask_A = jnp.stack([m, m * sn, m * sn, m], axis=-1)
    mask_L = jnp.stack([m, m, m * sn, m], axis=-1)
    return D, A, L, mask_D, mask_A, mask_L


# ---------------------------------------------------------------------------
# Plain-JAX reference mirroring the PyTorch module (validation only).
# ---------------------------------------------------------------------------
def _reference(X, C, eps=1e-3):
    X = X.astype(jnp.float32)
    B, R = X.shape[0], X.shape[1]
    mask = (C > 0).astype(jnp.float32)

    def normed_vec(V):
        return V / jnp.sqrt((V * V).sum(-1, keepdims=True) + eps)

    def lengths_fn(a, b):
        dX = b - a
        return jnp.sqrt((dX * dX).sum(-1) + eps)

    def angles_fn(ai, aj, ak):
        u_ji = normed_vec(ai - aj)
        u_jk = normed_vec(ak - aj)
        return jnp.arccos(jnp.clip((u_ji * u_jk).sum(-1), -1.0, 1.0))

    def dihedrals_fn(ai, aj, ak, al):
        u_ij = normed_vec(aj - ai)
        u_jk = normed_vec(ak - aj)
        u_kl = normed_vec(al - ak)
        n_ijk = normed_vec(jnp.cross(u_ij, u_jk))
        n_jkl = normed_vec(jnp.cross(u_jk, u_kl))
        cos_d = jnp.clip((n_ijk * n_jkl).sum(-1), -1.0, 1.0)
        return jnp.sign((u_ij * n_jkl).sum(-1)) * jnp.arccos(cos_d)

    X_chain = X[:, :, :3, :].reshape(B, 3 * R, 3)
    NCaC_L = lengths_fn(X_chain[:, 1:], X_chain[:, :-1])
    NCaC_A = jnp.pi - angles_fn(X_chain[:, :-2], X_chain[:, 1:-1], X_chain[:, 2:])
    NCaC_D = dihedrals_fn(X_chain[:, :-3], X_chain[:, 1:-2], X_chain[:, 2:-1], X_chain[:, 3:])
    X_CA, X_C, X_O = X[:, :, 1], X[:, :, 2], X[:, :, 3]
    X_N_next = X[:, 1:, 0]
    O_L = lengths_fn(X_C, X_O)
    O_A = jnp.pi - angles_fn(X_CA, X_C, X_O)
    O_D = dihedrals_fn(X_N_next, X_CA[:, :-1], X_C[:, :-1], X_O[:, :-1])

    Cm = (C.astype(jnp.int32) * (C > 0)).astype(jnp.int32)
    ii = jnp.repeat(Cm, 3, axis=1)
    mask_L = (ii[:, :-1] == ii[:, 1:]).astype(jnp.float32)
    mask_A = ((ii[:, :-2] == ii[:, 1:-1]) & (ii[:, :-2] == ii[:, 2:])).astype(jnp.float32)
    mask_D = ((ii[:, :-3] == ii[:, 1:-2]) & (ii[:, :-3] == ii[:, 2:-1])
              & (ii[:, :-3] == ii[:, 3:])).astype(jnp.float32)
    mask_O_D = (Cm[:, :-1] == Cm[:, 1:]).astype(jnp.float32)

    def pad(x, l, r):
        return jnp.pad(x, ((0, 0), (l, r)))

    def pad_pack(D, A, L, OD, OA, OL):
        D = pad(D, 1, 2).reshape(B, R, 3)
        A = pad(A, 0, 2).reshape(B, R, 3)
        L = pad(L, 0, 1).reshape(B, R, 3)
        OD = pad(OD, 0, 1)
        D = jnp.concatenate([D, OD[..., None]], -1)
        A = jnp.concatenate([A, OA[..., None]], -1)
        L = jnp.concatenate([L, OL[..., None]], -1)
        return D, A, L

    D, A, L = pad_pack(NCaC_D, NCaC_A, NCaC_L, O_D, O_A, O_L)
    mD, mA, mL = pad_pack(mask_D, mask_A, mask_L, mask_O_D, mask, mask)
    me = mask[..., None]
    return me * mD * D, me * mA * A, me * mL * L


if __name__ == "__main__":
    key = jax.random.PRNGKey(0)
    kx, kc = jax.random.split(key)
    B, R = 2, 300
    X = jax.random.normal(kx, (B, R, 4, 3), dtype=jnp.float32) * 3.0
    C = jax.random.randint(kc, (B, R), -1, 3, dtype=jnp.int32)  # chain map (<=0 masked)

    D, A, L = internal_coords(X, C, distance_eps=1e-3)
    jax.block_until_ready((D, A, L))

    D_ref, A_ref, L_ref = _reference(X, C, eps=1e-3)
    assert D.shape == (B, R, 4) and A.shape == (B, R, 4) and L.shape == (B, R, 4)
    assert jnp.allclose(L, L_ref, atol=1e-4, rtol=1e-4), "lengths mismatch vs reference"
    assert jnp.allclose(A, A_ref, atol=1e-4, rtol=1e-4), "angles mismatch vs reference"
    assert jnp.allclose(D, D_ref, atol=1e-4, rtol=1e-4), "dihedrals mismatch vs reference"
    print("KERNEL_OK")
</pallas_src>

<mosaic_0001>
module attributes {stable_mosaic.version = 11 : i64} {
  func.func @kernel(%arg0: i32, %arg1: i32, %arg2: memref<1x24x8x128xf32, #tpu.memory_space<vmem>>, %arg3: memref<1x4x8x128xf32, #tpu.memory_space<vmem>>, %arg4: memref<1x4x8x128xf32, #tpu.memory_space<vmem>>, %arg5: memref<1x4x8x128xf32, #tpu.memory_space<vmem>>) attributes {dimension_semantics = [#tpu.dimension_semantics<parallel>, #tpu.dimension_semantics<parallel>], iteration_bounds = array<i64: 2, 1>, scalar_prefetch = 0 : i64, scratch_operands = 0 : i64, tpu.core_type = #tpu.core_type<tc>, window_params = [{transform_indices = @transform_0, window_bounds = array<i64: 1, 24, 8, 128>}, {transform_indices = @transform_1, window_bounds = array<i64: 1, 4, 8, 128>}, {transform_indices = @transform_2, window_bounds = array<i64: 1, 4, 8, 128>}, {transform_indices = @transform_3, window_bounds = array<i64: 1, 4, 8, 128>}]} {
    %c0_i32 = arith.constant 0 : i32
    %c8_i32 = arith.constant 8 : i32
    %0 = arith.muli %c0_i32, %c8_i32 : i32
    %1 = tpu.assume_multiple %0, 8 : i32
    %c0 = arith.constant 0 : index
    %c0_0 = arith.constant 0 : index
    %2 = arith.index_cast %1 : i32 to index
    %c0_1 = arith.constant 0 : index
    %3 = vector.load %arg2[%c0, %c0_0, %2, %c0_1] : memref<1x24x8x128xf32, #tpu.memory_space<vmem>>, vector<1x1x8x128xf32>
    %4 = vector.shape_cast %3 : vector<1x1x8x128xf32> to vector<8x128xf32>
    %c0_2 = arith.constant 0 : index
    %c1 = arith.constant 1 : index
    %5 = arith.index_cast %1 : i32 to index
    %c0_3 = arith.constant 0 : index
    %6 = vector.load %arg2[%c0_2, %c1, %5, %c0_3] : memref<1x24x8x128xf32, #tpu.memory_space<vmem>>, vector<1x1x8x128xf32>
    %7 = vector.shape_cast %6 : vector<1x1x8x128xf32> to vector<8x128xf32>
    %c0_4 = arith.constant 0 : index
    %c2 = arith.constant 2 : index
    %8 = arith.index_cast %1 : i32 to index
    %c0_5 = arith.constant 0 : index
    %9 = vector.load %arg2[%c0_4, %c2, %8, %c0_5] : memref<1x24x8x128xf32, #tpu.memory_space<vmem>>, vector<1x1x8x128xf32>
    %10 = vector.shape_cast %9 : vector<1x1x8x128xf32> to vector<8x128xf32>
    %c0_6 = arith.constant 0 : index
    %c3 = arith.constant 3 : index
    %11 = arith.index_cast %1 : i32 to index
    %c0_7 = arith.constant 0 : index
    %12 = vector.load %arg2[%c0_6, %c3, %11, %c0_7] : memref<1x24x8x128xf32, #tpu.memory_space<vmem>>, vector<1x1x8x128xf32>
    %13 = vector.shape_cast %12 : vector<1x1x8x128xf32> to vector<8x128xf32>
    %c0_8 = arith.constant 0 : index
    %c4 = arith.constant 4 : index
    %14 = arith.index_cast %1 : i32 to index
    %c0_9 = arith.constant 0 : index
    %15 = vector.load %arg2[%c0_8, %c4, %14, %c0_9] : memref<1x24x8x128xf32, #tpu.memory_space<vmem>>, vector<1x1x8x128xf32>
    %16 = vector.shape_cast %15 : vector<1x1x8x128xf32> to vector<8x128xf32>
    %c0_10 = arith.constant 0 : index
    %c5 = arith.constant 5 : index
    %17 = arith.index_cast %1 : i32 to index
    %c0_11 = arith.constant 0 : index
    %18 = vector.load %arg2[%c0_10, %c5, %17, %c0_11] : memref<1x24x8x128xf32, #tpu.memory_space<vmem>>, vector<1x1x8x128xf32>
    %19 = vector.shape_cast %18 : vector<1x1x8x128xf32> to vector<8x128xf32>
    %c0_12 = arith.constant 0 : index
    %c6 = arith.constant 6 : index
    %20 = arith.index_cast %1 : i32 to index
    %c0_13 = arith.constant 0 : index
    %21 = vector.load %arg2[%c0_12, %c6, %20, %c0_13] : memref<1x24x8x128xf32, #tpu.memory_space<vmem>>, vector<1x1x8x128xf32>
    %22 = vector.shape_cast %21 : vector<1x1x8x128xf32> to vector<8x128xf32>
    %c0_14 = arith.constant 0 : index
    %c7 = arith.constant 7 : index
    %23 = arith.index_cast %1 : i32 to index
    %c0_15 = arith.constant 0 : index
    %24 = vector.load %arg2[%c0_14, %c7, %23, %c0_15] : memref<1x24x8x128xf32, #tpu.memory_space<vmem>>, vector<1x1x8x128xf32>
    %25 = vector.shape_cast %24 : vector<1x1x8x128xf32> to vector<8x128xf32>
    %c0_16 = arith.constant 0 : index
    %c8 = arith.constant 8 : index
    %26 = arith.index_cast %1 : i32 to index
    %c0_17 = arith.constant 0 : index
    %27 = vector.load %arg2[%c0_16, %c8, %26, %c0_17] : memref<1x24x8x128xf32, #tpu.memory_space<vmem>>, vector<1x1x8x128xf32>
    %28 = vector.shape_cast %27 : vector<1x1x8x128xf32> to vector<8x128xf32>
    %c0_18 = arith.constant 0 : index
    %c9 = arith.constant 9 : index
    %29 = arith.index_cast %1 : i32 to index
    %c0_19 = arith.constant 0 : index
    %30 = vector.load %arg2[%c0_18, %c9, %29, %c0_19] : memref<1x24x8x128xf32, #tpu.memory_space<vmem>>, vector<1x1x8x128xf32>
    %31 = vector.shape_cast %30 : vector<1x1x8x128xf32> to vector<8x128xf32>
    %c0_20 = arith.constant 0 : index
    %c10 = arith.constant 10 : index
    %32 = arith.index_cast %1 : i32 to index
    %c0_21 = arith.constant 0 : index
    %33 = vector.load %arg2[%c0_20, %c10, %32, %c0_21] : memref<1x24x8x128xf32, #tpu.memory_space<vmem>>, vector<1x1x8x128xf32>
    %34 = vector.shape_cast %33 : vector<1x1x8x128xf32> to vector<8x128xf32>
    %c0_22 = arith.constant 0 : index
    %c11 = arith.constant 11 : index
    %35 = arith.index_cast %1 : i32 to index
    %c0_23 = arith.constant 0 : index
    %36 = vector.load %arg2[%c0_22, %c11, %35, %c0_23] : memref<1x24x8x128xf32, #tpu.memory_space<vmem>>, vector<1x1x8x128xf32>
    %37 = vector.shape_cast %36 : vector<1x1x8x128xf32> to vector<8x128xf32>
    %c0_24 = arith.constant 0 : index
    %c12 = arith.constant 12 : index
    %38 = arith.index_cast %1 : i32 to index
    %c0_25 = arith.constant 0 : index
    %39 = vector.load %arg2[%c0_24, %c12, %38, %c0_25] : memref<1x24x8x128xf32, #tpu.memory_space<vmem>>, vector<1x1x8x128xf32>
    %40 = vector.shape_cast %39 : vector<1x1x8x128xf32> to vector<8x128xf32>
    %c0_26 = arith.constant 0 : index
    %c13 = arith.constant 13 : index
    %41 = arith.index_cast %1 : i32 to index
    %c0_27 = arith.constant 0 : index
    %42 = vector.load %arg2[%c0_26, %c13, %41, %c0_27] : memref<1x24x8x128xf32, #tpu.memory_space<vmem>>, vector<1x1x8x128xf32>
    %43 = vector.shape_cast %42 : vector<1x1x8x128xf32> to vector<8x128xf32>
    %c0_28 = arith.constant 0 : index
    %c14 = arith.constant 14 : index
    %44 = arith.index_cast %1 : i32 to index
    %c0_29 = arith.constant 0 : index
    %45 = vector.load %arg2[%c0_28, %c14, %44, %c0_29] : memref<1x24x8x128xf32, #tpu.memory_space<vmem>>, vector<1x1x8x128xf32>
    %46 = vector.shape_cast %45 : vector<1x1x8x128xf32> to vector<8x128xf32>
    %c0_30 = arith.constant 0 : index
    %c15 = arith.constant 15 : index
    %47 = arith.index_cast %1 : i32 to index
    %c0_31 = arith.constant 0 : index
    %48 = vector.load %arg2[%c0_30, %c15, %47, %c0_31] : memref<1x24x8x128xf32, #tpu.memory_space<vmem>>, vector<1x1x8x128xf32>
    %49 = vector.shape_cast %48 : vector<1x1x8x128xf32> to vector<8x128xf32>
    %c0_32 = arith.constant 0 : index
    %c16 = arith.constant 16 : index
    %50 = arith.index_cast %1 : i32 to index
    %c0_33 = arith.constant 0 : index
    %51 = vector.load %arg2[%c0_32, %c16, %50, %c0_33] : memref<1x24x8x128xf32, #tpu.memory_space<vmem>>, vector<1x1x8x128xf32>
    %52 = vector.shape_cast %51 : vector<1x1x8x128xf32> to vector<8x128xf32>
    %c0_34 = arith.constant 0 : index
    %c17 = arith.constant 17 : index
    %53 = arith.index_cast %1 : i32 to index
    %c0_35 = arith.constant 0 : index
    %54 = vector.load %arg2[%c0_34, %c17, %53, %c0_35] : memref<1x24x8x128xf32, #tpu.memory_space<vmem>>, vector<1x1x8x128xf32>
    %55 = vector.shape_cast %54 : vector<1x1x8x128xf32> to vector<8x128xf32>
    %c0_36 = arith.constant 0 : index
    %c18 = arith.constant 18 : index
    %56 = arith.index_cast %1 : i32 to index
    %c0_37 = arith.constant 0 : index
    %57 = vector.load %arg2[%c0_36, %c18, %56, %c0_37] : memref<1x24x8x128xf32, #tpu.memory_space<vmem>>, vector<1x1x8x128xf32>
    %58 = vector.shape_cast %57 : vector<1x1x8x128xf32> to vector<8x128xf32>
    %c0_38 = arith.constant 0 : index
    %c19 = arith.constant 19 : index
    %59 = arith.index_cast %1 : i32 to index
    %c0_39 = arith.constant 0 : index
    %60 = vector.load %arg2[%c0_38, %c19, %59, %c0_39] : memref<1x24x8x128xf32, #tpu.memory_space<vmem>>, vector<1x1x8x128xf32>
    %61 = vector.shape_cast %60 : vector<1x1x8x128xf32> to vector<8x128xf32>
    %c0_40 = arith.constant 0 : index
    %c20 = arith.constant 20 : index
    %62 = arith.index_cast %1 : i32 to index
    %c0_41 = arith.constant 0 : index
    %63 = vector.load %arg2[%c0_40, %c20, %62, %c0_41] : memref<1x24x8x128xf32, #tpu.memory_space<vmem>>, vector<1x1x8x128xf32>
    %64 = vector.shape_cast %63 : vector<1x1x8x128xf32> to vector<8x128xf32>
    %c0_42 = arith.constant 0 : index
    %c21 = arith.constant 21 : index
    %65 = arith.index_cast %1 : i32 to index
    %c0_43 = arith.constant 0 : index
    %66 = vector.load %arg2[%c0_42, %c21, %65, %c0_43] : memref<1x24x8x128xf32, #tpu.memory_space<vmem>>, vector<1x1x8x128xf32>
    %67 = vector.shape_cast %66 : vector<1x1x8x128xf32> to vector<8x128xf32>
    %c0_44 = arith.constant 0 : index
    %c22 = arith.constant 22 : index
    %68 = arith.index_cast %1 : i32 to index
    %c0_45 = arith.constant 0 : index
    %69 = vector.load %arg2[%c0_44, %c22, %68, %c0_45] : memref<1x24x8x128xf32, #tpu.memory_space<vmem>>, vector<1x1x8x128xf32>
    %70 = vector.shape_cast %69 : vector<1x1x8x128xf32> to vector<8x128xf32>
    %71 = arith.mulf %67, %70 : vector<8x128xf32>
    %c0_46 = arith.constant 0 : index
    %c23 = arith.constant 23 : index
    %72 = arith.index_cast %1 : i32 to index
    %c0_47 = arith.constant 0 : index
    %73 = vector.load %arg2[%c0_46, %c23, %72, %c0_47] : memref<1x24x8x128xf32, #tpu.memory_space<vmem>>, vector<1x1x8x128xf32>
    %74 = vector.shape_cast %73 : vector<1x1x8x128xf32> to vector<8x128xf32>
    %75 = arith.mulf %67, %74 : vector<8x128xf32>
    %76 = arith.subf %13, %4 : vector<8x128xf32>
    %77 = arith.subf %16, %7 : vector<8x128xf32>
    %78 = arith.subf %19, %10 : vector<8x128xf32>
    %79 = arith.mulf %76, %76 : vector<8x128xf32>
    %80 = arith.mulf %77, %77 : vector<8x128xf32>
    %81 = arith.addf %79, %80 : vector<8x128xf32>
    %82 = arith.mulf %78, %78 : vector<8x128xf32>
    %83 = arith.addf %81, %82 : vector<8x128xf32>
    %cst = arith.constant 1.000000e-03 : f32
    %84 = vector.broadcast %cst : f32 to vector<8x128xf32>
    %85 = arith.addf %83, %84 : vector<8x128xf32>
    %86 = math.rsqrt %85 : vector<8x128xf32>
    %87 = arith.mulf %76, %86 : vector<8x128xf32>
    %88 = arith.mulf %77, %86 : vector<8x128xf32>
    %89 = arith.mulf %78, %86 : vector<8x128xf32>
    %90 = arith.mulf %85, %86 : vector<8x128xf32>
    %91 = arith.subf %22, %13 : vector<8x128xf32>
    %92 = arith.subf %25, %16 : vector<8x128xf32>
    %93 = arith.subf %28, %19 : vector<8x128xf32>
    %94 = arith.mulf %91, %91 : vector<8x128xf32>
    %95 = arith.mulf %92, %92 : vector<8x128xf32>
    %96 = arith.addf %94, %95 : vector<8x128xf32>
    %97 = arith.mulf %93, %93 : vector<8x128xf32>
    %98 = arith.addf %96, %97 : vector<8x128xf32>
    %cst_48 = arith.constant 1.000000e-03 : f32
    %99 = vector.broadcast %cst_48 : f32 to vector<8x128xf32>
    %100 = arith.addf %98, %99 : vector<8x128xf32>
    %101 = math.rsqrt %100 : vector<8x128xf32>
    %102 = arith.mulf %91, %101 : vector<8x128xf32>
    %103 = arith.mulf %92, %101 : vector<8x128xf32>
    %104 = arith.mulf %93, %101 : vector<8x128xf32>
    %105 = arith.mulf %100, %101 : vector<8x128xf32>
    %106 = arith.subf %40, %22 : vector<8x128xf32>
    %107 = arith.subf %43, %25 : vector<8x128xf32>
    %108 = arith.subf %46, %28 : vector<8x128xf32>
    %109 = arith.mulf %106, %106 : vector<8x128xf32>
    %110 = arith.mulf %107, %107 : vector<8x128xf32>
    %111 = arith.addf %109, %110 : vector<8x128xf32>
    %112 = arith.mulf %108, %108 : vector<8x128xf32>
    %113 = arith.addf %111, %112 : vector<8x128xf32>
    %cst_49 = arith.constant 1.000000e-03 : f32
    %114 = vector.broadcast %cst_49 : f32 to vector<8x128xf32>
    %115 = arith.addf %113, %114 : vector<8x128xf32>
    %116 = math.rsqrt %115 : vector<8x128xf32>
    %117 = arith.mulf %106, %116 : vector<8x128xf32>
    %118 = arith.mulf %107, %116 : vector<8x128xf32>
    %119 = arith.mulf %108, %116 : vector<8x128xf32>
    %120 = arith.mulf %115, %116 : vector<8x128xf32>
    %121 = arith.subf %31, %22 : vector<8x128xf32>
    %122 = arith.subf %34, %25 : vector<8x128xf32>
    %123 = arith.subf %37, %28 : vector<8x128xf32>
    %124 = arith.mulf %121, %121 : vector<8x128xf32>
    %125 = arith.mulf %122, %122 : vector<8x128xf32>
    %126 = arith.addf %124, %125 : vector<8x128xf32>
    %127 = arith.mulf %123, %123 : vector<8x128xf32>
    %128 = arith.addf %126, %127 : vector<8x128xf32>
    %cst_50 = arith.constant 1.000000e-03 : f32
    %129 = vector.broadcast %cst_50 : f32 to vector<8x128xf32>
    %130 = arith.addf %128, %129 : vector<8x128xf32>
    %131 = math.rsqrt %130 : vector<8x128xf32>
    %132 = arith.mulf %121, %131 : vector<8x128xf32>
    %133 = arith.mulf %122, %131 : vector<8x128xf32>
    %134 = arith.mulf %123, %131 : vector<8x128xf32>
    %135 = arith.mulf %130, %131 : vector<8x128xf32>
    %136 = arith.subf %49, %40 : vector<8x128xf32>
    %137 = arith.subf %52, %43 : vector<8x128xf32>
    %138 = arith.subf %55, %46 : vector<8x128xf32>
    %139 = arith.mulf %136, %136 : vector<8x128xf32>
    %140 = arith.mulf %137, %137 : vector<8x128xf32>
    %141 = arith.addf %139, %140 : vector<8x128xf32>
    %142 = arith.mulf %138, %138 : vector<8x128xf32>
    %143 = arith.addf %141, %142 : vector<8x128xf32>
    %cst_51 = arith.constant 1.000000e-03 : f32
    %144 = vector.broadcast %cst_51 : f32 to vector<8x128xf32>
    %145 = arith.addf %143, %144 : vector<8x128xf32>
    %146 = math.rsqrt %145 : vector<8x128xf32>
    %147 = arith.mulf %136, %146 : vector<8x128xf32>
    %148 = arith.mulf %137, %146 : vector<8x128xf32>
    %149 = arith.mulf %138, %146 : vector<8x128xf32>
    %150 = arith.subf %4, %58 : vector<8x128xf32>
    %151 = arith.subf %7, %61 : vector<8x128xf32>
    %152 = arith.subf %10, %64 : vector<8x128xf32>
    %153 = arith.mulf %150, %150 : vector<8x128xf32>
    %154 = arith.mulf %151, %151 : vector<8x128xf32>
    %155 = arith.addf %153, %154 : vector<8x128xf32>
    %156 = arith.mulf %152, %152 : vector<8x128xf32>
    %157 = arith.addf %155, %156 : vector<8x128xf32>
    %cst_52 = arith.constant 1.000000e-03 : f32
    %158 = vector.broadcast %cst_52 : f32 to vector<8x128xf32>
    %159 = arith.addf %157, %158 : vector<8x128xf32>
    %160 = math.rsqrt %159 : vector<8x128xf32>
    %161 = arith.mulf %150, %160 : vector<8x128xf32>
    %162 = arith.mulf %151, %160 : vector<8x128xf32>
    %163 = arith.mulf %152, %160 : vector<8x128xf32>
    %164 = arith.subf %13, %40 : vector<8x128xf32>
    %165 = arith.subf %16, %43 : vector<8x128xf32>
    %166 = arith.subf %19, %46 : vector<8x128xf32>
    %167 = arith.mulf %164, %164 : vector<8x128xf32>
    %168 = arith.mulf %165, %165 : vector<8x128xf32>
    %169 = arith.addf %167, %168 : vector<8x128xf32>
    %170 = arith.mulf %166, %166 : vector<8x128xf32>
    %171 = arith.addf %169, %170 : vector<8x128xf32>
    %cst_53 = arith.constant 1.000000e-03 : f32
    %172 = vector.broadcast %cst_53 : f32 to vector<8x128xf32>
    %173 = arith.addf %171, %172 : vector<8x128xf32>
    %174 = math.rsqrt %173 : vector<8x128xf32>
    %175 = arith.mulf %164, %174 : vector<8x128xf32>
    %176 = arith.mulf %165, %174 : vector<8x128xf32>
    %177 = arith.mulf %166, %174 : vector<8x128xf32>
    %178 = arith.mulf %88, %104 : vector<8x128xf32>
    %179 = arith.mulf %89, %103 : vector<8x128xf32>
    %180 = arith.subf %178, %179 : vector<8x128xf32>
    %181 = arith.mulf %89, %102 : vector<8x128xf32>
    %182 = arith.mulf %87, %104 : vector<8x128xf32>
    %183 = arith.subf %181, %182 : vector<8x128xf32>
    %184 = arith.mulf %87, %103 : vector<8x128xf32>
    %185 = arith.mulf %88, %102 : vector<8x128xf32>
    %186 = arith.subf %184, %185 : vector<8x128xf32>
    %187 = arith.mulf %180, %180 : vector<8x128xf32>
    %188 = arith.mulf %183, %183 : vector<8x128xf32>
    %189 = arith.addf %187, %188 : vector<8x128xf32>
    %190 = arith.mulf %186, %186 : vector<8x128xf32>
    %191 = arith.addf %189, %190 : vector<8x128xf32>
    %cst_54 = arith.constant 1.000000e-03 : f32
    %192 = vector.broadcast %cst_54 : f32 to vector<8x128xf32>
    %193 = arith.addf %191, %192 : vector<8x128xf32>
    %194 = math.rsqrt %193 : vector<8x128xf32>
    %195 = arith.mulf %180, %194 : vector<8x128xf32>
    %196 = arith.mulf %183, %194 : vector<8x128xf32>
    %197 = arith.mulf %186, %194 : vector<8x128xf32>
    %198 = arith.mulf %103, %119 : vector<8x128xf32>
    %199 = arith.mulf %104, %118 : vector<8x128xf32>
    %200 = arith.subf %198, %199 : vector<8x128xf32>
    %201 = arith.mulf %104, %117 : vector<8x128xf32>
    %202 = arith.mulf %102, %119 : vector<8x128xf32>
    %203 = arith.subf %201, %202 : vector<8x128xf32>
    %204 = arith.mulf %102, %118 : vector<8x128xf32>
    %205 = arith.mulf %103, %117 : vector<8x128xf32>
    %206 = arith.subf %204, %205 : vector<8x128xf32>
    %207 = arith.mulf %200, %200 : vector<8x128xf32>
    %208 = arith.mulf %203, %203 : vector<8x128xf32>
    %209 = arith.addf %207, %208 : vector<8x128xf32>
    %210 = arith.mulf %206, %206 : vector<8x128xf32>
    %211 = arith.addf %209, %210 : vector<8x128xf32>
    %cst_55 = arith.constant 1.000000e-03 : f32
    %212 = vector.broadcast %cst_55 : f32 to vector<8x128xf32>
    %213 = arith.addf %211, %212 : vector<8x128xf32>
    %214 = math.rsqrt %213 : vector<8x128xf32>
    %215 = arith.mulf %200, %214 : vector<8x128xf32>
    %216 = arith.mulf %203, %214 : vector<8x128xf32>
    %217 = arith.mulf %206, %214 : vector<8x128xf32>
    %218 = arith.mulf %162, %89 : vector<8x128xf32>
    %219 = arith.mulf %163, %88 : vector<8x128xf32>
    %220 = arith.subf %218, %219 : vector<8x128xf32>
    %221 = arith.mulf %163, %87 : vector<8x128xf32>
    %222 = arith.mulf %161, %89 : vector<8x128xf32>
    %223 = arith.subf %221, %222 : vector<8x128xf32>
    %224 = arith.mulf %161, %88 : vector<8x128xf32>
    %225 = arith.mulf %162, %87 : vector<8x128xf32>
    %226 = arith.subf %224, %225 : vector<8x128xf32>
    %227 = arith.mulf %220, %220 : vector<8x128xf32>
    %228 = arith.mulf %223, %223 : vector<8x128xf32>
    %229 = arith.addf %227, %228 : vector<8x128xf32>
    %230 = arith.mulf %226, %226 : vector<8x128xf32>
    %231 = arith.addf %229, %230 : vector<8x128xf32>
    %cst_56 = arith.constant 1.000000e-03 : f32
    %232 = vector.broadcast %cst_56 : f32 to vector<8x128xf32>
    %233 = arith.addf %231, %232 : vector<8x128xf32>
    %234 = math.rsqrt %233 : vector<8x128xf32>
    %235 = arith.mulf %220, %234 : vector<8x128xf32>
    %236 = arith.mulf %223, %234 : vector<8x128xf32>
    %237 = arith.mulf %226, %234 : vector<8x128xf32>
    %238 = arith.mulf %118, %149 : vector<8x128xf32>
    %239 = arith.mulf %119, %148 : vector<8x128xf32>
    %240 = arith.subf %238, %239 : vector<8x128xf32>
    %241 = arith.mulf %119, %147 : vector<8x128xf32>
    %242 = arith.mulf %117, %149 : vector<8x128xf32>
    %243 = arith.subf %241, %242 : vector<8x128xf32>
    %244 = arith.mulf %117, %148 : vector<8x128xf32>
    %245 = arith.mulf %118, %147 : vector<8x128xf32>
    %246 = arith.subf %244, %245 : vector<8x128xf32>
    %247 = arith.mulf %240, %240 : vector<8x128xf32>
    %248 = arith.mulf %243, %243 : vector<8x128xf32>
    %249 = arith.addf %247, %248 : vector<8x128xf32>
    %250 = arith.mulf %246, %246 : vector<8x128xf32>
    %251 = arith.addf %249, %250 : vector<8x128xf32>
    %cst_57 = arith.constant 1.000000e-03 : f32
    %252 = vector.broadcast %cst_57 : f32 to vector<8x128xf32>
    %253 = arith.addf %251, %252 : vector<8x128xf32>
    %254 = math.rsqrt %253 : vector<8x128xf32>
    %255 = arith.mulf %240, %254 : vector<8x128xf32>
    %256 = arith.mulf %243, %254 : vector<8x128xf32>
    %257 = arith.mulf %246, %254 : vector<8x128xf32>
    %258 = arith.mulf %176, %104 : vector<8x128xf32>
    %259 = arith.mulf %177, %103 : vector<8x128xf32>
    %260 = arith.subf %258, %259 : vector<8x128xf32>
    %261 = arith.mulf %177, %102 : vector<8x128xf32>
    %262 = arith.mulf %175, %104 : vector<8x128xf32>
    %263 = arith.subf %261, %262 : vector<8x128xf32>
    %264 = arith.mulf %175, %103 : vector<8x128xf32>
    %265 = arith.mulf %176, %102 : vector<8x128xf32>
    %266 = arith.subf %264, %265 : vector<8x128xf32>
    %267 = arith.mulf %260, %260 : vector<8x128xf32>
    %268 = arith.mulf %263, %263 : vector<8x128xf32>
    %269 = arith.addf %267, %268 : vector<8x128xf32>
    %270 = arith.mulf %266, %266 : vector<8x128xf32>
    %271 = arith.addf %269, %270 : vector<8x128xf32>
    %cst_58 = arith.constant 1.000000e-03 : f32
    %272 = vector.broadcast %cst_58 : f32 to vector<8x128xf32>
    %273 = arith.addf %271, %272 : vector<8x128xf32>
    %274 = math.rsqrt %273 : vector<8x128xf32>
    %275 = arith.mulf %260, %274 : vector<8x128xf32>
    %276 = arith.mulf %263, %274 : vector<8x128xf32>
    %277 = arith.mulf %266, %274 : vector<8x128xf32>
    %278 = arith.mulf %103, %134 : vector<8x128xf32>
    %279 = arith.mulf %104, %133 : vector<8x128xf32>
    %280 = arith.subf %278, %279 : vector<8x128xf32>
    %281 = arith.mulf %104, %132 : vector<8x128xf32>
    %282 = arith.mulf %102, %134 : vector<8x128xf32>
    %283 = arith.subf %281, %282 : vector<8x128xf32>
    %284 = arith.mulf %102, %133 : vector<8x128xf32>
    %285 = arith.mulf %103, %132 : vector<8x128xf32>
    %286 = arith.subf %284, %285 : vector<8x128xf32>
    %287 = arith.mulf %280, %280 : vector<8x128xf32>
    %288 = arith.mulf %283, %283 : vector<8x128xf32>
    %289 = arith.addf %287, %288 : vector<8x128xf32>
    %290 = arith.mulf %286, %286 : vector<8x128xf32>
    %291 = arith.addf %289, %290 : vector<8x128xf32>
    %cst_59 = arith.constant 1.000000e-03 : f32
    %292 = vector.broadcast %cst_59 : f32 to vector<8x128xf32>
    %293 = arith.addf %291, %292 : vector<8x128xf32>
    %294 = math.rsqrt %293 : vector<8x128xf32>
    %295 = arith.mulf %280, %294 : vector<8x128xf32>
    %296 = arith.mulf %283, %294 : vector<8x128xf32>
    %297 = arith.mulf %286, %294 : vector<8x128xf32>
    %298 = arith.mulf %67, %90 : vector<8x128xf32>
    %c0_60 = arith.constant 0 : index
    %c0_61 = arith.constant 0 : index
    %299 = arith.index_cast %1 : i32 to index
    %c0_62 = arith.constant 0 : index
    %300 = vector.load %arg5[%c0_60, %c0_61, %299, %c0_62] : memref<1x4x8x128xf32, #tpu.memory_space<vmem>>, vector<1x1x8x128xf32>
    %301 = vector.shape_cast %300 : vector<1x1x8x128xf32> to vector<8x128xf32>
    %302 = vector.shape_cast %298 : vector<8x128xf32> to vector<1x1x8x128xf32>
    tpu.vector_store %arg5[%c0_60, %c0_61, %299, %c0_62], %302 {strides = array<i32>} : memref<1x4x8x128xf32, #tpu.memory_space<vmem>>, vector<1x1x8x128xf32>,
    %303 = arith.mulf %67, %105 : vector<8x128xf32>
    %c0_63 = arith.constant 0 : index
    %c1_64 = arith.constant 1 : index
    %304 = arith.index_cast %1 : i32 to index
    %c0_65 = arith.constant 0 : index
    %305 = vector.load %arg5[%c0_63, %c1_64, %304, %c0_65] : memref<1x4x8x128xf32, #tpu.memory_space<vmem>>, vector<1x1x8x128xf32>
    %306 = vector.shape_cast %305 : vector<1x1x8x128xf32> to vector<8x128xf32>
    %307 = vector.shape_cast %303 : vector<8x128xf32> to vector<1x1x8x128xf32>
    tpu.vector_store %arg5[%c0_63, %c1_64, %304, %c0_65], %307 {strides = array<i32>} : memref<1x4x8x128xf32, #tpu.memory_space<vmem>>, vector<1x1x8x128xf32>,
    %308 = arith.mulf %75, %120 : vector<8x128xf32>
    %c0_66 = arith.constant 0 : index
    %c2_67 = arith.constant 2 : index
    %309 = arith.index_cast %1 : i32 to index
    %c0_68 = arith.constant 0 : index
    %310 = vector.load %arg5[%c0_66, %c2_67, %309, %c0_68] : memref<1x4x8x128xf32, #tpu.memory_space<vmem>>, vector<1x1x8x128xf32>
    %311 = vector.shape_cast %310 : vector<1x1x8x128xf32> to vector<8x128xf32>
    %312 = vector.shape_cast %308 : vector<8x128xf32> to vector<1x1x8x128xf32>
    tpu.vector_store %arg5[%c0_66, %c2_67, %309, %c0_68], %312 {strides = array<i32>} : memref<1x4x8x128xf32, #tpu.memory_space<vmem>>, vector<1x1x8x128xf32>,
    %313 = arith.mulf %67, %135 : vector<8x128xf32>
    %c0_69 = arith.constant 0 : index
    %c3_70 = arith.constant 3 : index
    %314 = arith.index_cast %1 : i32 to index
    %c0_71 = arith.constant 0 : index
    %315 = vector.load %arg5[%c0_69, %c3_70, %314, %c0_71] : memref<1x4x8x128xf32, #tpu.memory_space<vmem>>, vector<1x1x8x128xf32>
    %316 = vector.shape_cast %315 : vector<1x1x8x128xf32> to vector<8x128xf32>
    %317 = vector.shape_cast %313 : vector<8x128xf32> to vector<1x1x8x128xf32>
    tpu.vector_store %arg5[%c0_69, %c3_70, %314, %c0_71], %317 {strides = array<i32>} : memref<1x4x8x128xf32, #tpu.memory_space<vmem>>, vector<1x1x8x128xf32>,
    %318 = arith.mulf %87, %102 : vector<8x128xf32>
    %319 = arith.mulf %88, %103 : vector<8x128xf32>
    %320 = arith.addf %318, %319 : vector<8x128xf32>
    %321 = arith.mulf %89, %104 : vector<8x128xf32>
    %322 = arith.addf %320, %321 : vector<8x128xf32>
    %cst_72 = arith.constant -1.000000e+00 : f32
    %323 = vector.broadcast %cst_72 : f32 to vector<8x128xf32>
    %324 = arith.maximumf %322, %323 : vector<8x128xf32>
    %cst_73 = arith.constant 1.000000e+00 : f32
    %325 = vector.broadcast %cst_73 : f32 to vector<8x128xf32>
    %326 = arith.minimumf %324, %325 : vector<8x128xf32>
    %327 = math.absf %326 : vector<8x128xf32>
    %cst_74 = arith.constant 5.000000e-01 : f32
    %328 = vector.broadcast %cst_74 : f32 to vector<8x128xf32>
    %329 = arith.cmpf ogt, %327, %328 : vector<8x128xf32>
    %cst_75 = arith.constant 1.000000e+00 : f32
    %330 = vector.broadcast %cst_75 : f32 to vector<8x128xf32>
    %331 = arith.subf %330, %327 : vector<8x128xf32>
    %cst_76 = arith.constant 5.000000e-01 : f32
    %332 = vector.broadcast %cst_76 : f32 to vector<8x128xf32>
    %333 = arith.mulf %332, %331 : vector<8x128xf32>
    %334 = arith.mulf %327, %327 : vector<8x128xf32>
    %335 = arith.select %329, %333, %334 : vector<8x128xi1>, vector<8x128xf32>
    %336 = math.sqrt %335 : vector<8x128xf32>
    %337 = arith.select %329, %336, %327 : vector<8x128xi1>, vector<8x128xf32>
    %cst_77 = arith.constant 4.216320e-02 : f32
    %338 = vector.broadcast %cst_77 : f32 to vector<8x128xf32>
    %339 = arith.mulf %338, %335 : vector<8x128xf32>
    %cst_78 = arith.constant 0.024181312 : f32
    %340 = vector.broadcast %cst_78 : f32 to vector<8x128xf32>
    %341 = arith.addf %339, %340 : vector<8x128xf32>
    %342 = arith.mulf %341, %335 : vector<8x128xf32>
    %cst_79 = arith.constant 0.0454700254 : f32
    %343 = vector.broadcast %cst_79 : f32 to vector<8x128xf32>
    %344 = arith.addf %342, %343 : vector<8x128xf32>
    %345 = arith.mulf %344, %335 : vector<8x128xf32>
    %cst_80 = arith.constant 0.0749530047 : f32
    %346 = vector.broadcast %cst_80 : f32 to vector<8x128xf32>
    %347 = arith.addf %345, %346 : vector<8x128xf32>
    %348 = arith.mulf %347, %335 : vector<8x128xf32>
    %cst_81 = arith.constant 0.166667521 : f32
    %349 = vector.broadcast %cst_81 : f32 to vector<8x128xf32>
    %350 = arith.addf %348, %349 : vector<8x128xf32>
    %351 = arith.mulf %337, %335 : vector<8x128xf32>
    %352 = arith.mulf %351, %350 : vector<8x128xf32>
    %353 = arith.addf %352, %337 : vector<8x128xf32>
    %cst_82 = arith.constant 2.000000e+00 : f32
    %354 = vector.broadcast %cst_82 : f32 to vector<8x128xf32>
    %355 = arith.mulf %354, %353 : vector<8x128xf32>
    %cst_83 = arith.constant 1.57079637 : f32
    %356 = vector.broadcast %cst_83 : f32 to vector<8x128xf32>
    %357 = arith.subf %356, %353 : vector<8x128xf32>
    %358 = arith.select %329, %355, %357 : vector<8x128xi1>, vector<8x128xf32>
    %cst_84 = arith.constant 0.000000e+00 : f32
    %359 = vector.broadcast %cst_84 : f32 to vector<8x128xf32>
    %360 = arith.cmpf olt, %326, %359 : vector<8x128xf32>
    %cst_85 = arith.constant 3.14159274 : f32
    %361 = vector.broadcast %cst_85 : f32 to vector<8x128xf32>
    %362 = arith.subf %361, %358 : vector<8x128xf32>
    %363 = arith.select %360, %362, %358 : vector<8x128xi1>, vector<8x128xf32>
    %364 = arith.mulf %67, %363 : vector<8x128xf32>
    %c0_86 = arith.constant 0 : index
    %c0_87 = arith.constant 0 : index
    %365 = arith.index_cast %1 : i32 to index
    %c0_88 = arith.constant 0 : index
    %366 = vector.load %arg4[%c0_86, %c0_87, %365, %c0_88] : memref<1x4x8x128xf32, #tpu.memory_space<vmem>>, vector<1x1x8x128xf32>
    %367 = vector.shape_cast %366 : vector<1x1x8x128xf32> to vector<8x128xf32>
    %368 = vector.shape_cast %364 : vector<8x128xf32> to vector<1x1x8x128xf32>
    tpu.vector_store %arg4[%c0_86, %c0_87, %365, %c0_88], %368 {strides = array<i32>} : memref<1x4x8x128xf32, #tpu.memory_space<vmem>>, vector<1x1x8x128xf32>,
    %369 = arith.mulf %102, %117 : vector<8x128xf32>
    %370 = arith.mulf %103, %118 : vector<8x128xf32>
    %371 = arith.addf %369, %370 : vector<8x128xf32>
    %372 = arith.mulf %104, %119 : vector<8x128xf32>
    %373 = arith.addf %371, %372 : vector<8x128xf32>
    %cst_89 = arith.constant -1.000000e+00 : f32
    %374 = vector.broadcast %cst_89 : f32 to vector<8x128xf32>
    %375 = arith.maximumf %373, %374 : vector<8x128xf32>
    %cst_90 = arith.constant 1.000000e+00 : f32
    %376 = vector.broadcast %cst_90 : f32 to vector<8x128xf32>
    %377 = arith.minimumf %375, %376 : vector<8x128xf32>
    %378 = math.absf %377 : vector<8x128xf32>
    %cst_91 = arith.constant 5.000000e-01 : f32
    %379 = vector.broadcast %cst_91 : f32 to vector<8x128xf32>
    %380 = arith.cmpf ogt, %378, %379 : vector<8x128xf32>
    %cst_92 = arith.constant 1.000000e+00 : f32
    %381 = vector.broadcast %cst_92 : f32 to vector<8x128xf32>
    %382 = arith.subf %381, %378 : vector<8x128xf32>
    %cst_93 = arith.constant 5.000000e-01 : f32
    %383 = vector.broadcast %cst_93 : f32 to vector<8x128xf32>
    %384 = arith.mulf %383, %382 : vector<8x128xf32>
    %385 = arith.mulf %378, %378 : vector<8x128xf32>
    %386 = arith.select %380, %384, %385 : vector<8x128xi1>, vector<8x128xf32>
    %387 = math.sqrt %386 : vector<8x128xf32>
    %388 = arith.select %380, %387, %378 : vector<8x128xi1>, vector<8x128xf32>
    %cst_94 = arith.constant 4.216320e-02 : f32
    %389 = vector.broadcast %cst_94 : f32 to vector<8x128xf32>
    %390 = arith.mulf %389, %386 : vector<8x128xf32>
    %cst_95 = arith.constant 0.024181312 : f32
    %391 = vector.broadcast %cst_95 : f32 to vector<8x128xf32>
    %392 = arith.addf %390, %391 : vector<8x128xf32>
    %393 = arith.mulf %392, %386 : vector<8x128xf32>
    %cst_96 = arith.constant 0.0454700254 : f32
    %394 = vector.broadcast %cst_96 : f32 to vector<8x128xf32>
    %395 = arith.addf %393, %394 : vector<8x128xf32>
    %396 = arith.mulf %395, %386 : vector<8x128xf32>
    %cst_97 = arith.constant 0.0749530047 : f32
    %397 = vector.broadcast %cst_97 : f32 to vector<8x128xf32>
    %398 = arith.addf %396, %397 : vector<8x128xf32>
    %399 = arith.mulf %398, %386 : vector<8x128xf32>
    %cst_98 = arith.constant 0.166667521 : f32
    %400 = vector.broadcast %cst_98 : f32 to vector<8x128xf32>
    %401 = arith.addf %399, %400 : vector<8x128xf32>
    %402 = arith.mulf %388, %386 : vector<8x128xf32>
    %403 = arith.mulf %402, %401 : vector<8x128xf32>
    %404 = arith.addf %403, %388 : vector<8x128xf32>
    %cst_99 = arith.constant 2.000000e+00 : f32
    %405 = vector.broadcast %cst_99 : f32 to vector<8x128xf32>
    %406 = arith.mulf %405, %404 : vector<8x128xf32>
    %cst_100 = arith.constant 1.57079637 : f32
    %407 = vector.broadcast %cst_100 : f32 to vector<8x128xf32>
    %408 = arith.subf %407, %404 : vector<8x128xf32>
    %409 = arith.select %380, %406, %408 : vector<8x128xi1>, vector<8x128xf32>
    %cst_101 = arith.constant 0.000000e+00 : f32
    %410 = vector.broadcast %cst_101 : f32 to vector<8x128xf32>
    %411 = arith.cmpf olt, %377, %410 : vector<8x128xf32>
    %cst_102 = arith.constant 3.14159274 : f32
    %412 = vector.broadcast %cst_102 : f32 to vector<8x128xf32>
    %413 = arith.subf %412, %409 : vector<8x128xf32>
    %414 = arith.select %411, %413, %409 : vector<8x128xi1>, vector<8x128xf32>
    %415 = arith.mulf %75, %414 : vector<8x128xf32>
    %c0_103 = arith.constant 0 : index
    %c1_104 = arith.constant 1 : index
    %416 = arith.index_cast %1 : i32 to index
    %c0_105 = arith.constant 0 : index
    %417 = vector.load %arg4[%c0_103, %c1_104, %416, %c0_105] : memref<1x4x8x128xf32, #tpu.memory_space<vmem>>, vector<1x1x8x128xf32>
    %418 = vector.shape_cast %417 : vector<1x1x8x128xf32> to vector<8x128xf32>
    %419 = vector.shape_cast %415 : vector<8x128xf32> to vector<1x1x8x128xf32>
    tpu.vector_store %arg4[%c0_103, %c1_104, %416, %c0_105], %419 {strides = array<i32>} : memref<1x4x8x128xf32, #tpu.memory_space<vmem>>, vector<1x1x8x128xf32>,
    %420 = arith.mulf %117, %147 : vector<8x128xf32>
    %421 = arith.mulf %118, %148 : vector<8x128xf32>
    %422 = arith.addf %420, %421 : vector<8x128xf32>
    %423 = arith.mulf %119, %149 : vector<8x128xf32>
    %424 = arith.addf %422, %423 : vector<8x128xf32>
    %cst_106 = arith.constant -1.000000e+00 : f32
    %425 = vector.broadcast %cst_106 : f32 to vector<8x128xf32>
    %426 = arith.maximumf %424, %425 : vector<8x128xf32>
    %cst_107 = arith.constant 1.000000e+00 : f32
    %427 = vector.broadcast %cst_107 : f32 to vector<8x128xf32>
    %428 = arith.minimumf %426, %427 : vector<8x128xf32>
    %429 = math.absf %428 : vector<8x128xf32>
    %cst_108 = arith.constant 5.000000e-01 : f32
    %430 = vector.broadcast %cst_108 : f32 to vector<8x128xf32>
    %431 = arith.cmpf ogt, %429, %430 : vector<8x128xf32>
    %cst_109 = arith.constant 1.000000e+00 : f32
    %432 = vector.broadcast %cst_109 : f32 to vector<8x128xf32>
    %433 = arith.subf %432, %429 : vector<8x128xf32>
    %cst_110 = arith.constant 5.000000e-01 : f32
    %434 = vector.broadcast %cst_110 : f32 to vector<8x128xf32>
    %435 = arith.mulf %434, %433 : vector<8x128xf32>
    %436 = arith.mulf %429, %429 : vector<8x128xf32>
    %437 = arith.select %431, %435, %436 : vector<8x128xi1>, vector<8x128xf32>
    %438 = math.sqrt %437 : vector<8x128xf32>
    %439 = arith.select %431, %438, %429 : vector<8x128xi1>, vector<8x128xf32>
    %cst_111 = arith.constant 4.216320e-02 : f32
    %440 = vector.broadcast %cst_111 : f32 to vector<8x128xf32>
    %441 = arith.mulf %440, %437 : vector<8x128xf32>
    %cst_112 = arith.constant 0.024181312 : f32
    %442 = vector.broadcast %cst_112 : f32 to vector<8x128xf32>
    %443 = arith.addf %441, %442 : vector<8x128xf32>
    %444 = arith.mulf %443, %437 : vector<8x128xf32>
    %cst_113 = arith.constant 0.0454700254 : f32
    %445 = vector.broadcast %cst_113 : f32 to vector<8x128xf32>
    %446 = arith.addf %444, %445 : vector<8x128xf32>
    %447 = arith.mulf %446, %437 : vector<8x128xf32>
    %cst_114 = arith.constant 0.0749530047 : f32
    %448 = vector.broadcast %cst_114 : f32 to vector<8x128xf32>
    %449 = arith.addf %447, %448 : vector<8x128xf32>
    %450 = arith.mulf %449, %437 : vector<8x128xf32>
    %cst_115 = arith.constant 0.166667521 : f32
    %451 = vector.broadcast %cst_115 : f32 to vector<8x128xf32>
    %452 = arith.addf %450, %451 : vector<8x128xf32>
    %453 = arith.mulf %439, %437 : vector<8x128xf32>
    %454 = arith.mulf %453, %452 : vector<8x128xf32>
    %455 = arith.addf %454, %439 : vector<8x128xf32>
    %cst_116 = arith.constant 2.000000e+00 : f32
    %456 = vector.broadcast %cst_116 : f32 to vector<8x128xf32>
    %457 = arith.mulf %456, %455 : vector<8x128xf32>
    %cst_117 = arith.constant 1.57079637 : f32
    %458 = vector.broadcast %cst_117 : f32 to vector<8x128xf32>
    %459 = arith.subf %458, %455 : vector<8x128xf32>
    %460 = arith.select %431, %457, %459 : vector<8x128xi1>, vector<8x128xf32>
    %cst_118 = arith.constant 0.000000e+00 : f32
    %461 = vector.broadcast %cst_118 : f32 to vector<8x128xf32>
    %462 = arith.cmpf olt, %428, %461 : vector<8x128xf32>
    %cst_119 = arith.constant 3.14159274 : f32
    %463 = vector.broadcast %cst_119 : f32 to vector<8x128xf32>
    %464 = arith.subf %463, %460 : vector<8x128xf32>
    %465 = arith.select %462, %464, %460 : vector<8x128xi1>, vector<8x128xf32>
    %466 = arith.mulf %75, %465 : vector<8x128xf32>
    %c0_120 = arith.constant 0 : index
    %c2_121 = arith.constant 2 : index
    %467 = arith.index_cast %1 : i32 to index
    %c0_122 = arith.constant 0 : index
    %468 = vector.load %arg4[%c0_120, %c2_121, %467, %c0_122] : memref<1x4x8x128xf32, #tpu.memory_space<vmem>>, vector<1x1x8x128xf32>
    %469 = vector.shape_cast %468 : vector<1x1x8x128xf32> to vector<8x128xf32>
    %470 = vector.shape_cast %466 : vector<8x128xf32> to vector<1x1x8x128xf32>
    tpu.vector_store %arg4[%c0_120, %c2_121, %467, %c0_122], %470 {strides = array<i32>} : memref<1x4x8x128xf32, #tpu.memory_space<vmem>>, vector<1x1x8x128xf32>,
    %471 = arith.mulf %102, %132 : vector<8x128xf32>
    %472 = arith.mulf %103, %133 : vector<8x128xf32>
    %473 = arith.addf %471, %472 : vector<8x128xf32>
    %474 = arith.mulf %104, %134 : vector<8x128xf32>
    %475 = arith.addf %473, %474 : vector<8x128xf32>
    %cst_123 = arith.constant -1.000000e+00 : f32
    %476 = vector.broadcast %cst_123 : f32 to vector<8x128xf32>
    %477 = arith.maximumf %475, %476 : vector<8x128xf32>
    %cst_124 = arith.constant 1.000000e+00 : f32
    %478 = vector.broadcast %cst_124 : f32 to vector<8x128xf32>
    %479 = arith.minimumf %477, %478 : vector<8x128xf32>
    %480 = math.absf %479 : vector<8x128xf32>
    %cst_125 = arith.constant 5.000000e-01 : f32
    %481 = vector.broadcast %cst_125 : f32 to vector<8x128xf32>
    %482 = arith.cmpf ogt, %480, %481 : vector<8x128xf32>
    %cst_126 = arith.constant 1.000000e+00 : f32
    %483 = vector.broadcast %cst_126 : f32 to vector<8x128xf32>
    %484 = arith.subf %483, %480 : vector<8x128xf32>
    %cst_127 = arith.constant 5.000000e-01 : f32
    %485 = vector.broadcast %cst_127 : f32 to vector<8x128xf32>
    %486 = arith.mulf %485, %484 : vector<8x128xf32>
    %487 = arith.mulf %480, %480 : vector<8x128xf32>
    %488 = arith.select %482, %486, %487 : vector<8x128xi1>, vector<8x128xf32>
    %489 = math.sqrt %488 : vector<8x128xf32>
    %490 = arith.select %482, %489, %480 : vector<8x128xi1>, vector<8x128xf32>
    %cst_128 = arith.constant 4.216320e-02 : f32
    %491 = vector.broadcast %cst_128 : f32 to vector<8x128xf32>
    %492 = arith.mulf %491, %488 : vector<8x128xf32>
    %cst_129 = arith.constant 0.024181312 : f32
    %493 = vector.broadcast %cst_129 : f32 to vector<8x128xf32>
    %494 = arith.addf %492, %493 : vector<8x128xf32>
    %495 = arith.mulf %494, %488 : vector<8x128xf32>
    %cst_130 = arith.constant 0.0454700254 : f32
    %496 = vector.broadcast %cst_130 : f32 to vector<8x128xf32>
    %497 = arith.addf %495, %496 : vector<8x128xf32>
    %498 = arith.mulf %497, %488 : vector<8x128xf32>
    %cst_131 = arith.constant 0.0749530047 : f32
    %499 = vector.broadcast %cst_131 : f32 to vector<8x128xf32>
    %500 = arith.addf %498, %499 : vector<8x128xf32>
    %501 = arith.mulf %500, %488 : vector<8x128xf32>
    %cst_132 = arith.constant 0.166667521 : f32
    %502 = vector.broadcast %cst_132 : f32 to vector<8x128xf32>
    %503 = arith.addf %501, %502 : vector<8x128xf32>
    %504 = arith.mulf %490, %488 : vector<8x128xf32>
    %505 = arith.mulf %504, %503 : vector<8x128xf32>
    %506 = arith.addf %505, %490 : vector<8x128xf32>
    %cst_133 = arith.constant 2.000000e+00 : f32
    %507 = vector.broadcast %cst_133 : f32 to vector<8x128xf32>
    %508 = arith.mulf %507, %506 : vector<8x128xf32>
    %cst_134 = arith.constant 1.57079637 : f32
    %509 = vector.broadcast %cst_134 : f32 to vector<8x128xf32>
    %510 = arith.subf %509, %506 : vector<8x128xf32>
    %511 = arith.select %482, %508, %510 : vector<8x128xi1>, vector<8x128xf32>
    %cst_135 = arith.constant 0.000000e+00 : f32
    %512 = vector.broadcast %cst_135 : f32 to vector<8x128xf32>
    %513 = arith.cmpf olt, %479, %512 : vector<8x128xf32>
    %cst_136 = arith.constant 3.14159274 : f32
    %514 = vector.broadcast %cst_136 : f32 to vector<8x128xf32>
    %515 = arith.subf %514, %511 : vector<8x128xf32>
    %516 = arith.select %513, %515, %511 : vector<8x128xi1>, vector<8x128xf32>
    %517 = arith.mulf %67, %516 : vector<8x128xf32>
    %c0_137 = arith.constant 0 : index
    %c3_138 = arith.constant 3 : index
    %518 = arith.index_cast %1 : i32 to index
    %c0_139 = arith.constant 0 : index
    %519 = vector.load %arg4[%c0_137, %c3_138, %518, %c0_139] : memref<1x4x8x128xf32, #tpu.memory_space<vmem>>, vector<1x1x8x128xf32>
    %520 = vector.shape_cast %519 : vector<1x1x8x128xf32> to vector<8x128xf32>
    %521 = vector.shape_cast %517 : vector<8x128xf32> to vector<1x1x8x128xf32>
    tpu.vector_store %arg4[%c0_137, %c3_138, %518, %c0_139], %521 {strides = array<i32>} : memref<1x4x8x128xf32, #tpu.memory_space<vmem>>, vector<1x1x8x128xf32>,
    %522 = arith.mulf %235, %195 : vector<8x128xf32>
    %523 = arith.mulf %236, %196 : vector<8x128xf32>
    %524 = arith.addf %522, %523 : vector<8x128xf32>
    %525 = arith.mulf %237, %197 : vector<8x128xf32>
    %526 = arith.addf %524, %525 : vector<8x128xf32>
    %527 = arith.mulf %161, %195 : vector<8x128xf32>
    %528 = arith.mulf %162, %196 : vector<8x128xf32>
    %529 = arith.addf %527, %528 : vector<8x128xf32>
    %530 = arith.mulf %163, %197 : vector<8x128xf32>
    %531 = arith.addf %529, %530 : vector<8x128xf32>
    %cst_140 = arith.constant -1.000000e+00 : f32
    %532 = vector.broadcast %cst_140 : f32 to vector<8x128xf32>
    %533 = arith.maximumf %526, %532 : vector<8x128xf32>
    %cst_141 = arith.constant 1.000000e+00 : f32
    %534 = vector.broadcast %cst_141 : f32 to vector<8x128xf32>
    %535 = arith.minimumf %533, %534 : vector<8x128xf32>
    %536 = math.absf %535 : vector<8x128xf32>
    %cst_142 = arith.constant 5.000000e-01 : f32
    %537 = vector.broadcast %cst_142 : f32 to vector<8x128xf32>
    %538 = arith.cmpf ogt, %536, %537 : vector<8x128xf32>
    %cst_143 = arith.constant 1.000000e+00 : f32
    %539 = vector.broadcast %cst_143 : f32 to vector<8x128xf32>
    %540 = arith.subf %539, %536 : vector<8x128xf32>
    %cst_144 = arith.constant 5.000000e-01 : f32
    %541 = vector.broadcast %cst_144 : f32 to vector<8x128xf32>
    %542 = arith.mulf %541, %540 : vector<8x128xf32>
    %543 = arith.mulf %536, %536 : vector<8x128xf32>
    %544 = arith.select %538, %542, %543 : vector<8x128xi1>, vector<8x128xf32>
    %545 = math.sqrt %544 : vector<8x128xf32>
    %546 = arith.select %538, %545, %536 : vector<8x128xi1>, vector<8x128xf32>
    %cst_145 = arith.constant 4.216320e-02 : f32
    %547 = vector.broadcast %cst_145 : f32 to vector<8x128xf32>
    %548 = arith.mulf %547, %544 : vector<8x128xf32>
    %cst_146 = arith.constant 0.024181312 : f32
    %549 = vector.broadcast %cst_146 : f32 to vector<8x128xf32>
    %550 = arith.addf %548, %549 : vector<8x128xf32>
    %551 = arith.mulf %550, %544 : vector<8x128xf32>
    %cst_147 = arith.constant 0.0454700254 : f32
    %552 = vector.broadcast %cst_147 : f32 to vector<8x128xf32>
    %553 = arith.addf %551, %552 : vector<8x128xf32>
    %554 = arith.mulf %553, %544 : vector<8x128xf32>
    %cst_148 = arith.constant 0.0749530047 : f32
    %555 = vector.broadcast %cst_148 : f32 to vector<8x128xf32>
    %556 = arith.addf %554, %555 : vector<8x128xf32>
    %557 = arith.mulf %556, %544 : vector<8x128xf32>
    %cst_149 = arith.constant 0.166667521 : f32
    %558 = vector.broadcast %cst_149 : f32 to vector<8x128xf32>
    %559 = arith.addf %557, %558 : vector<8x128xf32>
    %560 = arith.mulf %546, %544 : vector<8x128xf32>
    %561 = arith.mulf %560, %559 : vector<8x128xf32>
    %562 = arith.addf %561, %546 : vector<8x128xf32>
    %cst_150 = arith.constant 2.000000e+00 : f32
    %563 = vector.broadcast %cst_150 : f32 to vector<8x128xf32>
    %564 = arith.mulf %563, %562 : vector<8x128xf32>
    %cst_151 = arith.constant 1.57079637 : f32
    %565 = vector.broadcast %cst_151 : f32 to vector<8x128xf32>
    %566 = arith.subf %565, %562 : vector<8x128xf32>
    %567 = arith.select %538, %564, %566 : vector<8x128xi1>, vector<8x128xf32>
    %cst_152 = arith.constant 0.000000e+00 : f32
    %568 = vector.broadcast %cst_152 : f32 to vector<8x128xf32>
    %569 = arith.cmpf olt, %535, %568 : vector<8x128xf32>
    %cst_153 = arith.constant 3.14159274 : f32
    %570 = vector.broadcast %cst_153 : f32 to vector<8x128xf32>
    %571 = arith.subf %570, %567 : vector<8x128xf32>
    %572 = arith.select %569, %571, %567 : vector<8x128xi1>, vector<8x128xf32>
    %cst_154 = arith.constant 0.000000e+00 : f32
    %573 = vector.broadcast %cst_154 : f32 to vector<8x128xf32>
    %574 = arith.cmpf olt, %531, %573 : vector<8x128xf32>
    %cst_155 = arith.constant 0.000000e+00 : f32
    %575 = vector.broadcast %cst_155 : f32 to vector<8x128xf32>
    %576 = arith.subf %575, %572 : vector<8x128xf32>
    %577 = arith.select %574, %576, %572 : vector<8x128xi1>, vector<8x128xf32>
    %578 = arith.mulf %71, %577 : vector<8x128xf32>
    %c0_156 = arith.constant 0 : index
    %c0_157 = arith.constant 0 : index
    %579 = arith.index_cast %1 : i32 to index
    %c0_158 = arith.constant 0 : index
    %580 = vector.load %arg3[%c0_156, %c0_157, %579, %c0_158] : memref<1x4x8x128xf32, #tpu.memory_space<vmem>>, vector<1x1x8x128xf32>
    %581 = vector.shape_cast %580 : vector<1x1x8x128xf32> to vector<8x128xf32>
    %582 = vector.shape_cast %578 : vector<8x128xf32> to vector<1x1x8x128xf32>
    tpu.vector_store %arg3[%c0_156, %c0_157, %579, %c0_158], %582 {strides = array<i32>} : memref<1x4x8x128xf32, #tpu.memory_space<vmem>>, vector<1x1x8x128xf32>,
    %583 = arith.mulf %195, %215 : vector<8x128xf32>
    %584 = arith.mulf %196, %216 : vector<8x128xf32>
    %585 = arith.addf %583, %584 : vector<8x128xf32>
    %586 = arith.mulf %197, %217 : vector<8x128xf32>
    %587 = arith.addf %585, %586 : vector<8x128xf32>
    %588 = arith.mulf %87, %215 : vector<8x128xf32>
    %589 = arith.mulf %88, %216 : vector<8x128xf32>
    %590 = arith.addf %588, %589 : vector<8x128xf32>
    %591 = arith.mulf %89, %217 : vector<8x128xf32>
    %592 = arith.addf %590, %591 : vector<8x128xf32>
    %cst_159 = arith.constant -1.000000e+00 : f32
    %593 = vector.broadcast %cst_159 : f32 to vector<8x128xf32>
    %594 = arith.maximumf %587, %593 : vector<8x128xf32>
    %cst_160 = arith.constant 1.000000e+00 : f32
    %595 = vector.broadcast %cst_160 : f32 to vector<8x128xf32>
    %596 = arith.minimumf %594, %595 : vector<8x128xf32>
    %597 = math.absf %596 : vector<8x128xf32>
    %cst_161 = arith.constant 5.000000e-01 : f32
    %598 = vector.broadcast %cst_161 : f32 to vector<8x128xf32>
    %599 = arith.cmpf ogt, %597, %598 : vector<8x128xf32>
    %cst_162 = arith.constant 1.000000e+00 : f32
    %600 = vector.broadcast %cst_162 : f32 to vector<8x128xf32>
    %601 = arith.subf %600, %597 : vector<8x128xf32>
    %cst_163 = arith.constant 5.000000e-01 : f32
    %602 = vector.broadcast %cst_163 : f32 to vector<8x128xf32>
    %603 = arith.mulf %602, %601 : vector<8x128xf32>
    %604 = arith.mulf %597, %597 : vector<8x128xf32>
    %605 = arith.select %599, %603, %604 : vector<8x128xi1>, vector<8x128xf32>
    %606 = math.sqrt %605 : vector<8x128xf32>
    %607 = arith.select %599, %606, %597 : vector<8x128xi1>, vector<8x128xf32>
    %cst_164 = arith.constant 4.216320e-02 : f32
    %608 = vector.broadcast %cst_164 : f32 to vector<8x128xf32>
    %609 = arith.mulf %608, %605 : vector<8x128xf32>
    %cst_165 = arith.constant 0.024181312 : f32
    %610 = vector.broadcast %cst_165 : f32 to vector<8x128xf32>
    %611 = arith.addf %609, %610 : vector<8x128xf32>
    %612 = arith.mulf %611, %605 : vector<8x128xf32>
    %cst_166 = arith.constant 0.0454700254 : f32
    %613 = vector.broadcast %cst_166 : f32 to vector<8x128xf32>
    %614 = arith.addf %612, %613 : vector<8x128xf32>
    %615 = arith.mulf %614, %605 : vector<8x128xf32>
    %cst_167 = arith.constant 0.0749530047 : f32
    %616 = vector.broadcast %cst_167 : f32 to vector<8x128xf32>
    %617 = arith.addf %615, %616 : vector<8x128xf32>
    %618 = arith.mulf %617, %605 : vector<8x128xf32>
    %cst_168 = arith.constant 0.166667521 : f32
    %619 = vector.broadcast %cst_168 : f32 to vector<8x128xf32>
    %620 = arith.addf %618, %619 : vector<8x128xf32>
    %621 = arith.mulf %607, %605 : vector<8x128xf32>
    %622 = arith.mulf %621, %620 : vector<8x128xf32>
    %623 = arith.addf %622, %607 : vector<8x128xf32>
    %cst_169 = arith.constant 2.000000e+00 : f32
    %624 = vector.broadcast %cst_169 : f32 to vector<8x128xf32>
    %625 = arith.mulf %624, %623 : vector<8x128xf32>
    %cst_170 = arith.constant 1.57079637 : f32
    %626 = vector.broadcast %cst_170 : f32 to vector<8x128xf32>
    %627 = arith.subf %626, %623 : vector<8x128xf32>
    %628 = arith.select %599, %625, %627 : vector<8x128xi1>, vector<8x128xf32>
    %cst_171 = arith.constant 0.000000e+00 : f32
    %629 = vector.broadcast %cst_171 : f32 to vector<8x128xf32>
    %630 = arith.cmpf olt, %596, %629 : vector<8x128xf32>
    %cst_172 = arith.constant 3.14159274 : f32
    %631 = vector.broadcast %cst_172 : f32 to vector<8x128xf32>
    %632 = arith.subf %631, %628 : vector<8x128xf32>
    %633 = arith.select %630, %632, %628 : vector<8x128xi1>, vector<8x128xf32>
    %cst_173 = arith.constant 0.000000e+00 : f32
    %634 = vector.broadcast %cst_173 : f32 to vector<8x128xf32>
    %635 = arith.cmpf olt, %592, %634 : vector<8x128xf32>
    %cst_174 = arith.constant 0.000000e+00 : f32
    %636 = vector.broadcast %cst_174 : f32 to vector<8x128xf32>
    %637 = arith.subf %636, %633 : vector<8x128xf32>
    %638 = arith.select %635, %637, %633 : vector<8x128xi1>, vector<8x128xf32>
    %639 = arith.mulf %75, %638 : vector<8x128xf32>
    %c0_175 = arith.constant 0 : index
    %c1_176 = arith.constant 1 : index
    %640 = arith.index_cast %1 : i32 to index
    %c0_177 = arith.constant 0 : index
    %641 = vector.load %arg3[%c0_175, %c1_176, %640, %c0_177] : memref<1x4x8x128xf32, #tpu.memory_space<vmem>>, vector<1x1x8x128xf32>
    %642 = vector.shape_cast %641 : vector<1x1x8x128xf32> to vector<8x128xf32>
    %643 = vector.shape_cast %639 : vector<8x128xf32> to vector<1x1x8x128xf32>
    tpu.vector_store %arg3[%c0_175, %c1_176, %640, %c0_177], %643 {strides = array<i32>} : memref<1x4x8x128xf32, #tpu.memory_space<vmem>>, vector<1x1x8x128xf32>,
    %644 = arith.mulf %215, %255 : vector<8x128xf32>
    %645 = arith.mulf %216, %256 : vector<8x128xf32>
    %646 = arith.addf %644, %645 : vector<8x128xf32>
    %647 = arith.mulf %217, %257 : vector<8x128xf32>
    %648 = arith.addf %646, %647 : vector<8x128xf32>
    %649 = arith.mulf %102, %255 : vector<8x128xf32>
    %650 = arith.mulf %103, %256 : vector<8x128xf32>
    %651 = arith.addf %649, %650 : vector<8x128xf32>
    %652 = arith.mulf %104, %257 : vector<8x128xf32>
    %653 = arith.addf %651, %652 : vector<8x128xf32>
    %cst_178 = arith.constant -1.000000e+00 : f32
    %654 = vector.broadcast %cst_178 : f32 to vector<8x128xf32>
    %655 = arith.maximumf %648, %654 : vector<8x128xf32>
    %cst_179 = arith.constant 1.000000e+00 : f32
    %656 = vector.broadcast %cst_179 : f32 to vector<8x128xf32>
    %657 = arith.minimumf %655, %656 : vector<8x128xf32>
    %658 = math.absf %657 : vector<8x128xf32>
    %cst_180 = arith.constant 5.000000e-01 : f32
    %659 = vector.broadcast %cst_180 : f32 to vector<8x128xf32>
    %660 = arith.cmpf ogt, %658, %659 : vector<8x128xf32>
    %cst_181 = arith.constant 1.000000e+00 : f32
    %661 = vector.broadcast %cst_181 : f32 to vector<8x128xf32>
    %662 = arith.subf %661, %658 : vector<8x128xf32>
    %cst_182 = arith.constant 5.000000e-01 : f32
    %663 = vector.broadcast %cst_182 : f32 to vector<8x128xf32>
    %664 = arith.mulf %663, %662 : vector<8x128xf32>
    %665 = arith.mulf %658, %658 : vector<8x128xf32>
    %666 = arith.select %660, %664, %665 : vector<8x128xi1>, vector<8x128xf32>
    %667 = math.sqrt %666 : vector<8x128xf32>
    %668 = arith.select %660, %667, %658 : vector<8x128xi1>, vector<8x128xf32>
    %cst_183 = arith.constant 4.216320e-02 : f32
    %669 = vector.broadcast %cst_183 : f32 to vector<8x128xf32>
    %670 = arith.mulf %669, %666 : vector<8x128xf32>
    %cst_184 = arith.constant 0.024181312 : f32
    %671 = vector.broadcast %cst_184 : f32 to vector<8x128xf32>
    %672 = arith.addf %670, %671 : vector<8x128xf32>
    %673 = arith.mulf %672, %666 : vector<8x128xf32>
    %cst_185 = arith.constant 0.0454700254 : f32
    %674 = vector.broadcast %cst_185 : f32 to vector<8x128xf32>
    %675 = arith.addf %673, %674 : vector<8x128xf32>
    %676 = arith.mulf %675, %666 : vector<8x128xf32>
    %cst_186 = arith.constant 0.0749530047 : f32
    %677 = vector.broadcast %cst_186 : f32 to vector<8x128xf32>
    %678 = arith.addf %676, %677 : vector<8x128xf32>
    %679 = arith.mulf %678, %666 : vector<8x128xf32>
    %cst_187 = arith.constant 0.166667521 : f32
    %680 = vector.broadcast %cst_187 : f32 to vector<8x128xf32>
    %681 = arith.addf %679, %680 : vector<8x128xf32>
    %682 = arith.mulf %668, %666 : vector<8x128xf32>
    %683 = arith.mulf %682, %681 : vector<8x128xf32>
    %684 = arith.addf %683, %668 : vector<8x128xf32>
    %cst_188 = arith.constant 2.000000e+00 : f32
    %685 = vector.broadcast %cst_188 : f32 to vector<8x128xf32>
    %686 = arith.mulf %685, %684 : vector<8x128xf32>
    %cst_189 = arith.constant 1.57079637 : f32
    %687 = vector.broadcast %cst_189 : f32 to vector<8x128xf32>
    %688 = arith.subf %687, %684 : vector<8x128xf32>
    %689 = arith.select %660, %686, %688 : vector<8x128xi1>, vector<8x128xf32>
    %cst_190 = arith.constant 0.000000e+00 : f32
    %690 = vector.broadcast %cst_190 : f32 to vector<8x128xf32>
    %691 = arith.cmpf olt, %657, %690 : vector<8x128xf32>
    %cst_191 = arith.constant 3.14159274 : f32
    %692 = vector.broadcast %cst_191 : f32 to vector<8x128xf32>
    %693 = arith.subf %692, %689 : vector<8x128xf32>
    %694 = arith.select %691, %693, %689 : vector<8x128xi1>, vector<8x128xf32>
    %cst_192 = arith.constant 0.000000e+00 : f32
    %695 = vector.broadcast %cst_192 : f32 to vector<8x128xf32>
    %696 = arith.cmpf olt, %653, %695 : vector<8x128xf32>
    %cst_193 = arith.constant 0.000000e+00 : f32
    %697 = vector.broadcast %cst_193 : f32 to vector<8x128xf32>
    %698 = arith.subf %697, %694 : vector<8x128xf32>
    %699 = arith.select %696, %698, %694 : vector<8x128xi1>, vector<8x128xf32>
    %700 = arith.mulf %75, %699 : vector<8x128xf32>
    %c0_194 = arith.constant 0 : index
    %c2_195 = arith.constant 2 : index
    %701 = arith.index_cast %1 : i32 to index
    %c0_196 = arith.constant 0 : index
    %702 = vector.load %arg3[%c0_194, %c2_195, %701, %c0_196] : memref<1x4x8x128xf32, #tpu.memory_space<vmem>>, vector<1x1x8x128xf32>
    %703 = vector.shape_cast %702 : vector<1x1x8x128xf32> to vector<8x128xf32>
    %704 = vector.shape_cast %700 : vector<8x128xf32> to vector<1x1x8x128xf32>
    tpu.vector_store %arg3[%c0_194, %c2_195, %701, %c0_196], %704 {strides = array<i32>} : memref<1x4x8x128xf32, #tpu.memory_space<vmem>>, vector<1x1x8x128xf32>,
    %705 = arith.mulf %275, %295 : vector<8x128xf32>
    %706 = arith.mulf %276, %296 : vector<8x128xf32>
    %707 = arith.addf %705, %706 : vector<8x128xf32>
    %708 = arith.mulf %277, %297 : vector<8x128xf32>
    %709 = arith.addf %707, %708 : vector<8x128xf32>
    %710 = arith.mulf %175, %295 : vector<8x128xf32>
    %711 = arith.mulf %176, %296 : vector<8x128xf32>
    %712 = arith.addf %710, %711 : vector<8x128xf32>
    %713 = arith.mulf %177, %297 : vector<8x128xf32>
    %714 = arith.addf %712, %713 : vector<8x128xf32>
    %cst_197 = arith.constant -1.000000e+00 : f32
    %715 = vector.broadcast %cst_197 : f32 to vector<8x128xf32>
    %716 = arith.maximumf %709, %715 : vector<8x128xf32>
    %cst_198 = arith.constant 1.000000e+00 : f32
    %717 = vector.broadcast %cst_198 : f32 to vector<8x128xf32>
    %718 = arith.minimumf %716, %717 : vector<8x128xf32>
    %719 = math.absf %718 : vector<8x128xf32>
    %cst_199 = arith.constant 5.000000e-01 : f32
    %720 = vector.broadcast %cst_199 : f32 to vector<8x128xf32>
    %721 = arith.cmpf ogt, %719, %720 : vector<8x128xf32>
    %cst_200 = arith.constant 1.000000e+00 : f32
    %722 = vector.broadcast %cst_200 : f32 to vector<8x128xf32>
    %723 = arith.subf %722, %719 : vector<8x128xf32>
    %cst_201 = arith.constant 5.000000e-01 : f32
    %724 = vector.broadcast %cst_201 : f32 to vector<8x128xf32>
    %725 = arith.mulf %724, %723 : vector<8x128xf32>
    %726 = arith.mulf %719, %719 : vector<8x128xf32>
    %727 = arith.select %721, %725, %726 : vector<8x128xi1>, vector<8x128xf32>
    %728 = math.sqrt %727 : vector<8x128xf32>
    %729 = arith.select %721, %728, %719 : vector<8x128xi1>, vector<8x128xf32>
    %cst_202 = arith.constant 4.216320e-02 : f32
    %730 = vector.broadcast %cst_202 : f32 to vector<8x128xf32>
    %731 = arith.mulf %730, %727 : vector<8x128xf32>
    %cst_203 = arith.constant 0.024181312 : f32
    %732 = vector.broadcast %cst_203 : f32 to vector<8x128xf32>
    %733 = arith.addf %731, %732 : vector<8x128xf32>
    %734 = arith.mulf %733, %727 : vector<8x128xf32>
    %cst_204 = arith.constant 0.0454700254 : f32
    %735 = vector.broadcast %cst_204 : f32 to vector<8x128xf32>
    %736 = arith.addf %734, %735 : vector<8x128xf32>
    %737 = arith.mulf %736, %727 : vector<8x128xf32>
    %cst_205 = arith.constant 0.0749530047 : f32
    %738 = vector.broadcast %cst_205 : f32 to vector<8x128xf32>
    %739 = arith.addf %737, %738 : vector<8x128xf32>
    %740 = arith.mulf %739, %727 : vector<8x128xf32>
    %cst_206 = arith.constant 0.166667521 : f32
    %741 = vector.broadcast %cst_206 : f32 to vector<8x128xf32>
    %742 = arith.addf %740, %741 : vector<8x128xf32>
    %743 = arith.mulf %729, %727 : vector<8x128xf32>
    %744 = arith.mulf %743, %742 : vector<8x128xf32>
    %745 = arith.addf %744, %729 : vector<8x128xf32>
    %cst_207 = arith.constant 2.000000e+00 : f32
    %746 = vector.broadcast %cst_207 : f32 to vector<8x128xf32>
    %747 = arith.mulf %746, %745 : vector<8x128xf32>
    %cst_208 = arith.constant 1.57079637 : f32
    %748 = vector.broadcast %cst_208 : f32 to vector<8x128xf32>
    %749 = arith.subf %748, %745 : vector<8x128xf32>
    %750 = arith.select %721, %747, %749 : vector<8x128xi1>, vector<8x128xf32>
    %cst_209 = arith.constant 0.000000e+00 : f32
    %751 = vector.broadcast %cst_209 : f32 to vector<8x128xf32>
    %752 = arith.cmpf olt, %718, %751 : vector<8x128xf32>
    %cst_210 = arith.constant 3.14159274 : f32
    %753 = vector.broadcast %cst_210 : f32 to vector<8x128xf32>
    %754 = arith.subf %753, %750 : vector<8x128xf32>
    %755 = arith.select %752, %754, %750 : vector<8x128xi1>, vector<8x128xf32>
    %cst_211 = arith.constant 0.000000e+00 : f32
    %756 = vector.broadcast %cst_211 : f32 to vector<8x128xf32>
    %757 = arith.cmpf olt, %714, %756 : vector<8x128xf32>
    %cst_212 = arith.constant 0.000000e+00 : f32
    %758 = vector.broadcast %cst_212 : f32 to vector<8x128xf32>
    %759 = arith.subf %758, %755 : vector<8x128xf32>
    %760 = arith.select %757, %759, %755 : vector<8x128xi1>, vector<8x128xf32>
    %761 = arith.mulf %75, %760 : vector<8x128xf32>
    %c0_213 = arith.constant 0 : index
    %c3_214 = arith.constant 3 : index
    %762 = arith.index_cast %1 : i32 to index
    %c0_215 = arith.constant 0 : index
    %763 = vector.load %arg3[%c0_213, %c3_214, %762, %c0_215] : memref<1x4x8x128xf32, #tpu.memory_space<vmem>>, vector<1x1x8x128xf32>
    %764 = vector.shape_cast %763 : vector<1x1x8x128xf32> to vector<8x128xf32>
    %765 = vector.shape_cast %761 : vector<8x128xf32> to vector<1x1x8x128xf32>
    tpu.vector_store %arg3[%c0_213, %c3_214, %762, %c0_215], %765 {strides = array<i32>} : memref<1x4x8x128xf32, #tpu.memory_space<vmem>>, vector<1x1x8x128xf32>,
    %c1_i32 = arith.constant 1 : i32
    return
  }
  func.func @transform_0(%arg0: i32, %arg1: i32) -> (i32, i32, i32, i32) {
    %c0_i32 = arith.constant 0 : i32
    %c0_i32_0 = arith.constant 0 : i32
    %c0_i32_1 = arith.constant 0 : i32
    return %arg0, %c0_i32, %arg1, %c0_i32_0 : i32, i32, i32, i32
  }
  func.func @transform_1(%arg0: i32, %arg1: i32) -> (i32, i32, i32, i32) {
    %c0_i32 = arith.constant 0 : i32
    %c0_i32_0 = arith.constant 0 : i32
    %c0_i32_1 = arith.constant 0 : i32
    return %arg0, %c0_i32, %arg1, %c0_i32_0 : i32, i32, i32, i32
  }
  func.func @transform_2(%arg0: i32, %arg1: i32) -> (i32, i32, i32, i32) {
    %c0_i32 = arith.constant 0 : i32
    %c0_i32_0 = arith.constant 0 : i32
    %c0_i32_1 = arith.constant 0 : i32
    return %arg0, %c0_i32, %arg1, %c0_i32_0 : i32, i32, i32, i32
  }
  func.func @transform_3(%arg0: i32, %arg1: i32) -> (i32, i32, i32, i32) {
    %c0_i32 = arith.constant 0 : i32
    %c0_i32_0 = arith.constant 0 : i32
    %c0_i32_1 = arith.constant 0 : i32
    return %arg0, %c0_i32, %arg1, %c0_i32_0 : i32, i32, i32, i32
  }
}

</mosaic_0001>

<bundles_post_ra>
// kernel: tpu_custom_call.1
= control target key start
LH: loop header
LB: loop body
LE: loop exit
PB: predicated region body
PF: predicated region fallthrough
CT: control target
= control target key end

     0   :  { %9 = vsyncpa [#allocation3], 0  ;;  %s2555_s0 = inlined_call_operand.hbm [shape: f32[2,24,8,128], index: 0, kind: input, shape index: {}]   ;;  %s2556_s1 = inlined_call_operand.hbm [shape: f32[2,4,8,128], index: 1, kind: output, shape index: {0}]   ;;  %s2557_s2 = inlined_call_operand.hbm [shape: f32[2,4,8,128], index: 2, kind: output, shape index: {1}]   ;;  %s2558_s3 = inlined_call_operand.hbm [shape: f32[2,4,8,128], index: 3, kind: output, shape index: {2}]  }
   0x1   :  { %11 = vsyncpa [#allocation3 + $0x1], 0 }
   0x2   :  { %12 = vsyncpa [#allocation4], 0 }
   0x3   :  { %14 = vsyncpa [#allocation4 + $0x1], 0 }
   0x4   :  { %15 = vsyncpa [#allocation7], 0 }
   0x5   :  { %17 = vsyncpa [#allocation7 + $0x1], 0  ;;  %s1505_s12 = smov 0   ;;  %s1507_s13 = smov 0  }
   0x6   :  { %s1509_s14 = smov 0   ;;  %s1511_s15 = smov 0  }
   0x7   :  { %s1513_s16 = smov 0   ;;  %s1515_s17 = smov 0  }
   0x8 LB: > { %s1536_s18 = sadd.s32 4294967295, %s1475_s17   ;;  %s1120_s19 = sadd.s32 4294967294, %s1475_s17   ;;  %s1475_s17 = sphi %s1515_s17, %s23_s17   ;;  %s1471_s16 = sphi %s1513_s16, %s2585_s16   ;;  %s1467_s15 = sphi %s1511_s15, %s2584_s15   ;;  %s1463_s14 = sphi %s1509_s14, %s2583_s14   ;;  %s1459_s13 = sphi %s1507_s13, %s2582_s13   ;;  %s1455_s12 = sphi %s1505_s12, %s2581_s12  }
   0x9   : > { %s35_s20 = sadd.s32 1, %s1471_s16  ;;  %s44_s21 = sadd.s32 1, %s1463_s14 }
   0xa   : > { %p37_p0 = scmp.ge.s32.totalorder %s35_s20, 2  ;;  %p51_p1 = scmp.ne.s32.totalorder %s1463_s14, %s1459_s13 }
   0xb   : > { %p52_p2 = scmp.eq.s32.totalorder %s1475_s17, 0  ;;  %p57_p3 = scmp.ne.s32.totalorder %s1459_s13, %s1455_s12 }
   0xc   : > { %s2587_s20 = smov (%p37_p0, %s35_s20), 0  ;;  %p58_p5 = scmp.eq.s32.totalorder %s1536_s18, 0 }
   0xd   : > { %p1548_p4 = por %p52_p2, %p51_p1  ;;  %s39_s23 = ssub.s32 %s1471_s16, %s2587_s20 }
   0xe   : > { %p83_p6 = scmp.eq.s32.totalorder %s1536_s18, 1  ;;  %p42_p7 = scmp.eq.s32.totalorder %s39_s23, 0 }
   0xf   : > { %p1556_p8 = por %p58_p5, %p57_p3  ;;  %p89_p10 = scmp.eq.s32.totalorder %s1120_s19, 1 }
  0x10   : > { %p1560_p9 = por %p83_p6, %p51_p1  ;;  %p1207_p13 = scmp.lt.s32.totalorder %s1475_s17, 2 }
  0x11   : > { %s1567_s26 = scalar_select %p42_p7, %s1463_s14, %s44_s21  }
  0x12   : > { %s2564_s25 = scalar_select %p1560_p9, 1, 0 }
  0x13   : > { %p1569_p11 = por %p89_p10, %p57_p3  ;;  %s165_s28 = sand.u32 1, %s1463_s14  }
  0x14   : > { %s1182_s29 = smul.u32 192, %s165_s28  ;;  %p1579_p0 = pnand %p1207_p13, %p1548_p4 }
  0x15   : > { %s2565_s27 = scalar_select %p1569_p11, 1, 0 }
  0x16   : > { %s1183_s30 = smul.u32 3072, %s1471_s16  ;;  %s169_s8 = scalar_lea.vmem [#allocation2], %s1182_s29 }
  0x17   : > { %s177_s9 = sshll.u32 %s169_s8, 4  ;;  %s1591_s10 = scalar_lea.sflag [#allocation3], %s165_s28  ;;  %s1588_s9 = int_to_ptr.vmem [resolvable:$true] %s177_s9 }
  0x18   : > { %s1586_s7 = scalar_lea.hbm %s2555_s0, %s1183_s30  ;;  %p1305_p3 = pneg %p1579_p0 }
  0x19   : > { %s1303_s11 = scalar_lea.hbm %s1586_s7, 3072  ;;  %s1308_s23 = scalar_lea.hbm %s2555_s0, 6144 }
  0x1a   : > { %p1304_p2 = scmp.ne.s32.totalorder %s1586_s7, %s1303_s11  ;;  %p1309_p6 = scmp.lt.u32.totalorder %s1586_s7, %s2555_s0 }
  0x1b   : > { %p1310_p7 = scmp.lt.u32.totalorder %s1308_s23, %s1303_s11  ;;  %p1312_p13 = scmp.lt.u32.totalorder %s1303_s11, %s1586_s7 }
  0x1c   : > { %p1306_p4 = pnand %p1305_p3, %p1304_p2 }
  0x1d   : > { %p1311_p10 = por %p1310_p7, %p1309_p6 }
  0x1e   : > { %p1307_p5 = pneg %p1306_p4 }
  0x1f   : > { %p1313_p12 = por %p1312_p13, %p1311_p10 }
  0x21   : > { %p1314_p1 = pnand %p1313_p12, %p1307_p5 }
  0x23   : > { %1317 = shalt.err (!%p1314_p1)
}
  0x24   : > { %s1318_s28 = scalar_lea.vmem %s1588_s9, 3072  ;;  %s1477_s5 = smov [#allocation2]  }
  0x25   : > { %p1319_p2 = scmp.ne.s32.totalorder %s1588_s9, %s1318_s28  ;;  %s1323_s6 = sshll.u32 %s1477_s5, 4  ;;  %s1324_s6 = int_to_ptr.vmem [resolvable:$false] %s1323_s6 }
  0x26   : > { %s1325_s8 = scalar_lea.vmem %s1324_s6, 6144  ;;  %p1326_p9 = scmp.lt.s32.totalorder %s1588_s9, %s1324_s6 }
  0x27   : > { %p1321_p4 = pnand %p1319_p2, %p1305_p3  ;;  %p1327_p6 = scmp.lt.s32.totalorder %s1325_s8, %s1318_s28 }
  0x29   : > { %p1322_p11 = pneg %p1321_p4  ;;  %p1328_p7 = por %p1327_p6, %p1326_p9 }
  0x2b   : > { %p1329_p10 = pnand %p1328_p7, %p1322_p11 }
  0x2d   : > { %1332 = shalt.err (!%p1329_p10)
}
  0x2e   : > { %s1478_s11 = smov 128   ;;  %s1479_s21 = smov 8  }
  0x2f   : > { %1196 = dma.hbm_to_vmem [thread:$0]  (!%p1579_p0), %s1586_s7, 3072, %s1588_s9, %s1591_s10, %s1478_s11, %s1478_s11, %s1479_s21  }
  0x30   : > { %p185_p12 = scmp.lt.s32.totalorder %s1475_s17, 3  ;;  %p2567_p1 = scmp.ge.s32.totalorder %s1475_s17, 1 }
  0x32   : > { %p186_p3 = pnand %p2567_p1, %p185_p12 }
  0x33   : > { %s1623_s22 = sand.u32 (!%p186_p3), 1, %s1459_s13  }
  0x34   : > { %189 = sbr.rel (%p186_p3) target bundleno = 290 (0x122), region = 24  ;;  %s192_s30 = scalar_lea.sflag (!%p186_p3), [#allocation3], %s1623_s22 }
  0x35   : > { %s1184_s23 = smul.u32 (!%p186_p3), 192, %s1623_s22 }
  0x37   : > { %s1627_s29 = scalar_lea.vmem (!%p186_p3), [#allocation2], %s1184_s23 }
  0x3b   : > { %1442 = dma.done.wait (%p1556_p8), %s192_s30, 3072  }
  0x3c   : > { %1444 = vsyncadd (%p1556_p8), %s192_s30, 4294964224  ;;  %v1634_v0 = vld [vmem:[%s1627_s29] sm:$0xff]  ;;  %v1637_v1 = vld [vmem:[%s1627_s29 + $0x8] sm:$0xff]  ;;  %s1766_s24 = sshll.u32 %s1623_s22, 5  ;;  %s883_s10 = sand.u32 1, %s1536_s18  }
  0x3d   : > { %v1640_v2 = vld [vmem:[%s1627_s29 + $0x10] sm:$0xff]  ;;  %v1643_v3 = vld [vmem:[%s1627_s29 + $0x18] sm:$0xff]  ;;  %v1646_v4 = vld [vmem:[%s1627_s29 + $0x20] sm:$0xff]  ;;  %s1813_s4 = scalar_lea.vmem [#allocation8], %s1766_s24  ;;  %s2075_s7 = scalar_lea.vmem [#allocation6], %s1766_s24 }
  0x3e   : > { %v1649_v5 = vld [vmem:[%s1627_s29 + $0x28] sm:$0xff]  ;;  %v1133_v6 = vld [vmem:[%s1627_s29 + $0x30] sm:$0xff]  ;;  %v1134_v7 = vld [vmem:[%s1627_s29 + $0x38] sm:$0xff]  ;;  %v1656_v9 = vsub.f32 %v1643_v3, %v1634_v0  ;;  %v1660_v10 = vsub.f32 %v1646_v4, %v1637_v1  ;;  %s920_s9 = sshll.u32 %s2075_s7, 4  ;;  %s2136_s28 = sshll.u32 %s1467_s15, 9  ;;  %s2138_s9 = int_to_ptr.vmem [resolvable:$true] %s920_s9 }
  0x3f   : > { %v1135_v8 = vld [vmem:[%s1627_s29 + $0x40] sm:$0xff]  ;;  %v1664_v11 = vsub.f32 %v1649_v5, %v1640_v2  ;;  %v1667_v12 = vsub.f32 %v1133_v6, %v1643_v3  ;;  %v1670_v13 = vsub.f32 %v1134_v7, %v1646_v4  ;;  %v1140_v16 = vld [vmem:[%s1627_s29 + $0x68] sm:$0xff]  ;;  %v1141_v20 = vld [vmem:[%s1627_s29 + $0x70] sm:$0xff]  ;;  %s937_s5 = sshll.u32 %s1813_s4, 4  ;;  %s2164_s8 = scalar_lea.hbm %s2557_s2, %s2136_s28  ;;  %s2166_s5 = int_to_ptr.vmem [resolvable:$true] %s937_s5 }
  0x40   : > { %v1673_v14 = vsub.f32 %v1135_v8, %v1649_v5  ;;  %v1139_v15 = vld [vmem:[%s1627_s29 + $0x60] sm:$0xff]  ;;  %v303_v17 = vmul.f32 %v1656_v9, %v1656_v9  ;;  %v304_v18 = vmul.f32 %v1660_v10, %v1660_v10  ;;  %v1142_v22 = vld [vmem:[%s1627_s29 + $0x78] sm:$0xff]  ;;  %v1144_v27 = vld [vmem:[%s1627_s29 + $0x88] sm:$0xff]  ;;  %v1696_v30 = vsub.f32 %v1140_v16, %v1134_v7  ;;  %s2177_s23 = scalar_lea.hbm %s2558_s3, %s2136_s28  ;;  %s2200_s30 = scalar_lea.sflag [#allocation7], %s883_s10 }
  0x41   : > { %v306_v19 = vmul.f32 %v1664_v11, %v1664_v11  ;;  %v1684_v21 = vsub.f32 %v1139_v15, %v1133_v6  ;;  %v317_v23 = vmul.f32 %v1667_v12, %v1667_v12  ;;  %v318_v24 = vmul.f32 %v1670_v13, %v1670_v13  ;;  %v1143_v26 = vld [vmem:[%s1627_s29 + $0x80] sm:$0xff]  ;;  %v1136_v28 = vld [vmem:[%s1627_s29 + $0x48] sm:$0xff]  ;;  %v1137_v37 = vld [vmem:[%s1627_s29 + $0x50] sm:$0xff]  ;;  %p2578_p9 = scmp.ne.s32.totalorder %s2564_s25, 0 }
  0x42   : > { %v320_v25 = vmul.f32 %v1673_v14, %v1673_v14  ;;  %v305_v29 = vadd.f32 %v304_v18, %v303_v17  ;;  %v1698_v31 = vsub.f32 %v1141_v20, %v1135_v8  ;;  %v1702_v34 = vsub.f32 %v1142_v22, %v1139_v15  ;;  %v1138_v38 = vld [vmem:[%s1627_s29 + $0x58] sm:$0xff]  ;;  %v1145_v51 = vld [vmem:[%s1627_s29 + $0x90] sm:$0xff]  ;;  %v1147_v56 = vld [vmem:[%s1627_s29 + $0xa0] sm:$0xff] }
  0x43   : > { %v331_v32 = vmul.f32 %v1684_v21, %v1684_v21  ;;  %v319_v33 = vadd.f32 %v318_v24, %v317_v23  ;;  %v1704_v35 = vsub.f32 %v1143_v26, %v1140_v16  ;;  %v1706_v36 = vsub.f32 %v1144_v27, %v1141_v20  ;;  %v1146_v52 = vld [vmem:[%s1627_s29 + $0x98] sm:$0xff]  ;;  %v1771_v27 = vld [vmem:[%s1627_s29 + $0xa8] sm:$0xff] }
  0x44   : > { %v307_v39 = vadd.f32 %v306_v19, %v305_v29  ;;  %v332_v40 = vmul.f32 %v1696_v30, %v1696_v30  ;;  %v334_v41 = vmul.f32 %v1698_v31, %v1698_v31  ;;  %v1714_v42 = vsub.f32 %v1136_v28, %v1133_v6  ;;  %v1150_v28 = vld [vmem:[%s1627_s29 + $0xb8] sm:$0xff] }
  0x45   : > { %v321_v43 = vadd.f32 %v320_v25, %v319_v33  ;;  %v359_v44 = vmul.f32 %v1702_v34, %v1702_v34  ;;  %v360_v45 = vmul.f32 %v1704_v35, %v1704_v35  ;;  %v362_v46 = vmul.f32 %v1706_v36, %v1706_v36 }
  0x46   : > { %v308_v47 = vadd.f32 0.001, %v307_v39  ;;  %v333_v48 = vadd.f32 %v332_v40, %v331_v32  ;;  %v1722_v49 = vsub.f32 %v1137_v37, %v1134_v7  ;;  %v1724_v50 = vsub.f32 %v1138_v38, %v1135_v8 }
  0x47   : > { %v322_v53 = vadd.f32 0.001, %v321_v43  ;;  %v361_v54 = vadd.f32 %v360_v45, %v359_v44  ;;  %v345_v55 = vmul.f32 %v1714_v42, %v1714_v42  ;;  %v1736_v61 = vsub.f32 %v1634_v0, %v1145_v51 }
  0x48   : > { %1261 = vrsqrt.f32 %v308_v47  ;;  %v335_v57 = vadd.f32 %v334_v41, %v333_v48  ;;  %v346_v58 = vmul.f32 %v1722_v49, %v1722_v49  ;;  %v348_v59 = vmul.f32 %v1724_v50, %v1724_v50 }
  0x49   : > { %1263 = vrsqrt.f32 %v322_v53  ;;  %v363_v60 = vadd.f32 %v362_v46, %v361_v54  ;;  %v1739_v62 = vsub.f32 %v1637_v1, %v1146_v52  ;;  %v1742_v7 = vsub.f32 %v1640_v2, %v1147_v56 }
  0x4a   : > { %v336_v63 = vadd.f32 0.001, %v335_v57  ;;  %v347_v6 = vadd.f32 %v346_v58, %v345_v55  ;;  %v1745_v8 = vsub.f32 %v1643_v3, %v1139_v15  ;;  %v372_v18 = vmul.f32 %v1736_v61, %v1736_v61 }
  0x4b   : > { %v364_v17 = vadd.f32 0.001, %v363_v60  ;;  %v373_v0 = vmul.f32 %v1739_v62, %v1739_v62  ;;  %v1752_v19 = vsub.f32 %v1646_v4, %v1140_v16  ;;  %v375_v2 = vmul.f32 %v1742_v7, %v1742_v7 }
  0x4c   : > { %1265 = vrsqrt.f32 %v336_v63  ;;  %v349_v1 = vadd.f32 %v348_v59, %v347_v6  ;;  %v1757_v3 = vsub.f32 %v1649_v5, %v1141_v20  ;;  %v385_v22 = vmul.f32 %v1745_v8, %v1745_v8 }
  0x4d   : > { %1267 = vrsqrt.f32 %v364_v17  ;;  %v374_v15 = vadd.f32 %v373_v0, %v372_v18  ;;  %v386_v23 = vmul.f32 %v1752_v19, %v1752_v19 }
  0x4e   : > { %v350_v4 = vadd.f32 0.001, %v349_v1  ;;  %v388_v16 = vmul.f32 %v1757_v3, %v1757_v3 }
  0x4f   : > { %v376_v24 = vadd.f32 %v375_v2, %v374_v15  ;;  %v387_v25 = vadd.f32 %v386_v23, %v385_v22 }
  0x50   : > { %1269 = vrsqrt.f32 %v350_v4 }
  0x51   : > { %v377_v26 = vadd.f32 0.001, %v376_v24  ;;  %v1768_v5 = vadd.f32 %v388_v16, %v387_v25 }
  0x52   : > { %v1262_v20 = vpop.eup %1261 }
  0x53   : > { %v1264_v29 = vpop.eup %1263  ;;  %v1775_v32 = vmul.f32 %v1262_v20, %v1656_v9  ;;  %v1778_v33 = vmul.f32 %v1262_v20, %v1660_v10  ;;  %v1781_v37 = vmul.f32 %v1262_v20, %v1664_v11  ;;  %v313_v38 = vmul.f32 %v1262_v20, %v308_v47 }
  0x54   : > { %v1784_v39 = vmul.f32 %v1264_v29, %v1667_v12  ;;  %v1787_v40 = vmul.f32 %v1264_v29, %v1670_v13  ;;  %v1790_v41 = vmul.f32 %v1264_v29, %v1673_v14  ;;  %v327_v43 = vmul.f32 %v1264_v29, %v322_v53 }
  0x55   : > { %v1793_v9 = vmul.f32 %v1150_v28, %v1771_v27  ;;  %v509_v10 = vmul.f32 %v1771_v27, %v313_v38  ;;  %1271 = vrsqrt.f32 %v377_v26 }
  0x56   : > { %v1266_v11 = vpop.eup %1265  ;;  %v520_v44 = vmul.f32 %v1784_v39, %v1775_v32  ;;  %v521_v12 = vmul.f32 %v1787_v40, %v1778_v33  ;;  %v523_v13 = vmul.f32 %v1790_v41, %v1781_v37  ;;  %v511_v14 = vmul.f32 %v1771_v27, %v327_v43 }
  0x57   : > { %v1268_v45 = vpop.eup %1267  ;;  %v1804_v46 = vmul.f32 %v1266_v11, %v1684_v21  ;;  %v1807_v47 = vmul.f32 %v1266_v11, %v1696_v30  ;;  %v1810_v48 = vmul.f32 %v1266_v11, %v1698_v31  ;;  %510 = vst [vmem:[%s1813_s4] sm:$0xff] %v509_v10  ;;  %v341_v51 = vmul.f32 %v1266_v11, %v336_v63 }
  0x58   : > { %v522_v52 = vadd.f32 %v521_v12, %v520_v44  ;;  %v1817_v53 = vmul.f32 %v1268_v45, %v1702_v34  ;;  %v1820_v54 = vmul.f32 %v1268_v45, %v1704_v35  ;;  %v1823_v21 = vmul.f32 %v1268_v45, %v1706_v36  ;;  %1151 = vst [vmem:[%s1813_s4 + $0x8] sm:$0xff] %v511_v14 }
  0x59   : > { %v560_v30 = vmul.f32 %v1804_v46, %v1784_v39  ;;  %v561_v31 = vmul.f32 %v1807_v47, %v1787_v40  ;;  %v563_v55 = vmul.f32 %v1810_v48, %v1790_v41  ;;  %v514_v34 = vmul.f32 %v341_v51, %v1793_v9 }
  0x5a   : > { %v1270_v56 = vpop.eup %1269  ;;  %v1833_v57 = vadd.f32 %v523_v13, %v522_v52  ;;  %v601_v35 = vmul.f32 %v1817_v53, %v1804_v46  ;;  %v602_v36 = vmul.f32 %v1820_v54, %v1807_v47  ;;  %v604_v58 = vmul.f32 %v1823_v21, %v1810_v48 }
  0x5b   : > { %v562_v59 = vadd.f32 %v561_v31, %v560_v30  ;;  %v1842_v60 = vmul.f32 %v1270_v56, %v1714_v42  ;;  %v1845_v63 = vmul.f32 %v1270_v56, %v1722_v49  ;;  %v1848_v6 = vmul.f32 %v1270_v56, %v1724_v50  ;;  %1152 = vst [vmem:[%s1813_s4 + $0x10] sm:$0xff] %v514_v34 }
  0x5c   : > { %v1154_v17 = vclamps-f32 %v1833_v57, 1.0  ;;  %v603_v18 = vadd.f32 %v602_v36, %v601_v35  ;;  %v355_v0 = vmul.f32 %v1270_v56, %v350_v4  ;;  %v395_v11 = vmul.f32 %v1790_v41, %v1778_v33 }
  0x5d   : > { %v1852_v1 = vadd.f32 %v563_v55, %v562_v59  ;;  %v642_v2 = vmul.f32 %v1842_v60, %v1784_v39  ;;  %v643_v42 = vmul.f32 %v1845_v63, %v1787_v40  ;;  %v645_v49 = vmul.f32 %v1848_v6, %v1790_v41 }
  0x5e   : > { %v1862_v50 = vand.u32 2147483647, %v1154_v17  ;;  %v1864_v15 = vadd.f32 %v604_v58, %v603_v18  ;;  %v517_v22 = vmul.f32 %v1771_v27, %v355_v0  ;;  %v1889_v44 = vadd.f32 0.001, %v1768_v5 }
  0x5f   : > { %v1272_v23 = vpop.eup %1271  ;;  %v1155_v4 = vclamps-f32 %v1852_v1, 1.0  ;;  %v644_v16 = vadd.f32 %v643_v42, %v642_v2  ;;  %v396_v5 = vmul.f32 %v1787_v40, %v1781_v37  ;;  %v398_v31 = vmul.f32 %v1784_v39, %v1781_v37 }
  0x60   : > { %v529_v24 = vsub.f32 1.0, %v1862_v50  ;;  %v531_v25 = vmul.f32 %v1862_v50, %v1862_v50  ;;  %v2561_v26 = vclamps-f32 %v1864_v15, 1.0  ;;  %1153 = vst [vmem:[%s1813_s4 + $0x18] sm:$0xff] %v517_v22  ;;  %vm528_vm0 = vcmp.gt.f32.partialorder %v1862_v50, 0.5  ;;  %s1333_s4 = scalar_lea.vmem %s2138_s9, 512 }
  0x61   : > { %v1876_v20 = vand.u32 2147483647, %v1155_v4  ;;  %v1878_v28 = vadd.f32 %v645_v49, %v644_v16  ;;  %v1914_v34 = vmul.f32 %v1272_v23, %v1736_v61  ;;  %v1917_v56 = vmul.f32 %v1272_v23, %v1739_v62  ;;  %p1334_p8 = scmp.ne.s32.totalorder %s2138_s9, %s1333_s4 }
  0x62   : > { %v530_v29 = vmul.f32 0.5, %v529_v24  ;;  %v1882_v38 = vand.u32 2147483647, %v2561_v26  ;;  %v399_v59 = vmul.f32 %v1790_v41, %v1775_v32  ;;  %v1933_v62 = vmul.f32 %v1272_v23, %v1742_v7 }
  0x63   : > { %v569_v43 = vsub.f32 1.0, %v1876_v20  ;;  %v2560_v10 = vclamps-f32 %v1878_v28, 1.0  ;;  %v571_v13 = vmul.f32 %v1876_v20, %v1876_v20  ;;  %vm568_vm1 = vcmp.gt.f32.partialorder %v1876_v20, 0.5  ;;  %p1335_p11 = pnand %p1334_p8, %p2578_p9 }
  0x64   : > { %v1893_v12 = vsel %vm528_vm0, %v530_v29, %v531_v25  ;;  %v610_v14 = vsub.f32 1.0, %v1882_v38  ;;  %v612_v45 = vmul.f32 %v1882_v38, %v1882_v38  ;;  %vm609_vm2 = vcmp.gt.f32.partialorder %v1882_v38, 0.5 }
  0x65   : > { %1273 = vrsqrt.f32 %v1893_v12  ;;  %v541_v51 = vmul.f32 0.0421632, %v1893_v12  ;;  %v570_v52 = vmul.f32 0.5, %v569_v43  ;;  %vm535_vm3 = vcmp.eq.f32.partialorder %v1893_v12, inf  ;;  %p1336_p0 = pneg %p1335_p11 }
  0x66   : > { %v611_v30 = vmul.f32 0.5, %v610_v14  ;;  %v1911_v55 = vand.u32 2147483647, %v2560_v10  ;;  %vm537_vm4 = vcmp.eq.f32.partialorder %v1893_v12, 0.0  ;;  %v538_v61 = vand.u32 2147483648, %v1893_v12 }
  0x67   : > { %v542_v35 = vadd.f32 0.024181312, %v541_v51  ;;  %v1922_v36 = vsel %vm568_vm1, %v570_v52, %v571_v13  ;;  %v1935_v18 = vsub.f32 %v395_v11, %v396_v5  ;;  %v1949_v24 = vsub.f32 %v398_v31, %v399_v59 }
  0x68   : > { %v1926_v58 = vsel %vm609_vm2, %v611_v30, %v612_v45  ;;  %1275 = vrsqrt.f32 %v1922_v36  ;;  %v581_v2 = vmul.f32 0.0421632, %v1922_v36  ;;  %vm650_vm5 = vcmp.gt.f32.partialorder %v1911_v55, 0.5 }
  0x69   : > { %v543_v0 = vmul.f32 %v542_v35, %v1893_v12  ;;  %1277 = vrsqrt.f32 %v1926_v58  ;;  %vm575_vm6 = vcmp.eq.f32.partialorder %v1922_v36, inf  ;;  %v578_v42 = vand.u32 2147483648, %v1922_v36 }
  0x6a   : > { %v622_v49 = vmul.f32 0.0421632, %v1926_v58  ;;  %v651_v22 = vsub.f32 1.0, %v1911_v55  ;;  %vm577_vm7 = vcmp.eq.f32.partialorder %v1922_v36, 0.0  ;;  %v582_v23 = vadd.f32 0.024181312, %v581_v2 }
  0x6b   : > { %v544_v7 = vadd.f32 0.045470025, %v543_v0  ;;  %vm616_vm8 = vcmp.eq.f32.partialorder %v1926_v58, inf  ;;  %v653_v16 = vmul.f32 %v1911_v55, %v1911_v55  ;;  %v401_v43 = vmul.f32 %v1787_v40, %v1775_v32 }
  0x6c   : > { %v623_v25 = vadd.f32 0.024181312, %v622_v49  ;;  %v652_v29 = vmul.f32 0.5, %v651_v22  ;;  %v402_v11 = vmul.f32 %v1784_v39, %v1778_v33  ;;  %v583_v14 = vmul.f32 %v582_v23, %v1922_v36 }
  0x6d   : > { %v545_v13 = vmul.f32 %v544_v7, %v1893_v12  ;;  %vm618_vm9 = vcmp.eq.f32.partialorder %v1926_v58, 0.0  ;;  %v404_v45 = vmul.f32 %v1935_v18, %v1935_v18  ;;  %v405_v31 = vmul.f32 %v1949_v24, %v1949_v24 }
  0x6e   : > { %v624_v51 = vmul.f32 %v623_v25, %v1926_v58  ;;  %v1963_v52 = vsel %vm650_vm5, %v652_v29, %v653_v16  ;;  %v1965_v30 = vsub.f32 %v401_v43, %v402_v11  ;;  %v584_v0 = vadd.f32 0.045470025, %v583_v14 }
  0x6f   : > { %v1274_v5 = vpop.eup %1273  ;;  %v546_v59 = vadd.f32 0.074953005, %v545_v13  ;;  %1279 = vrsqrt.f32 %v1963_v52  ;;  %v619_v2 = vand.u32 2147483648, %v1926_v58  ;;  %v660_v22 = vand.u32 2147483648, %v1963_v52 }
  0x70   : > { %v534_v35 = vmul.f32 %v1274_v5, %v1893_v12  ;;  %v625_v49 = vadd.f32 0.045470025, %v624_v51  ;;  %v433_v7 = vmul.f32 %v1917_v56, %v1781_v37  ;;  %v585_v25 = vmul.f32 %v584_v0, %v1922_v36 }
  0x71   : > { %v547_v16 = vmul.f32 %v546_v59, %v1893_v12  ;;  %vm657_vm10 = vcmp.eq.f32.partialorder %v1963_v52, inf  ;;  %v663_v29 = vmul.f32 0.0421632, %v1963_v52  ;;  %vm659_vm11 = vcmp.eq.f32.partialorder %v1963_v52, 0.0 }
  0x72   : > { %v536_v23 = vsel %vm535_vm3, %v1893_v12, %v534_v35  ;;  %v1276_v43 = vpop.eup %1275  ;;  %v626_v13 = vmul.f32 %v625_v49, %v1926_v58  ;;  %v406_v14 = vadd.f32 %v405_v31, %v404_v45  ;;  %v407_v5 = vmul.f32 %v1965_v30, %v1965_v30 }
  0x73   : > { %v539_v11 = vsel %vm537_vm4, %v538_v61, %v536_v23  ;;  %v1278_v51 = vpop.eup %1277  ;;  %v548_v59 = vadd.f32 0.16666752, %v547_v16  ;;  %v574_v0 = vmul.f32 %v1276_v43, %v1922_v36  ;;  %v586_v10 = vadd.f32 0.074953005, %v585_v25 }
  0x74   : > { %v540_v35 = vsel %vm528_vm0, %v539_v11, %v1862_v50  ;;  %vm1995_vm12 = vcmp.lt.f32.partialorder %v1154_v17, 0.0  ;;  %v615_v45 = vmul.f32 %v1278_v51, %v1926_v58  ;;  %v627_v31 = vadd.f32 0.074953005, %v626_v13 }
  0x75   : > { %v549_v26 = vmul.f32 %v540_v35, %v1893_v12  ;;  %v664_v49 = vadd.f32 0.024181312, %v663_v29  ;;  %v576_v23 = vsel %vm575_vm6, %v1922_v36, %v574_v0  ;;  %v587_v16 = vmul.f32 %v586_v10, %v1922_v36 }
  0x76   : > { %v408_v43 = vadd.f32 %v407_v5, %v406_v14  ;;  %v434_v12 = vmul.f32 %v1933_v62, %v1778_v33  ;;  %v579_v57 = vsel %vm577_vm7, %v578_v42, %v576_v23  ;;  %v617_v17 = vsel %vm616_vm8, %v1926_v58, %v615_v45 }
  0x77   : > { %v550_v25 = vmul.f32 %v549_v26, %v548_v59  ;;  %v628_v29 = vmul.f32 %v627_v31, %v1926_v58  ;;  %v580_v11 = vsel %vm568_vm1, %v579_v57, %v1876_v20  ;;  %v588_v13 = vadd.f32 0.16666752, %v587_v16 }
  0x78   : > { %v620_v10 = vsel %vm618_vm9, %v619_v2, %v617_v17  ;;  %v665_v14 = vmul.f32 %v664_v49, %v1963_v52  ;;  %v589_v5 = vmul.f32 %v580_v11, %v1922_v36  ;;  %vm2021_vm13 = vcmp.lt.f32.partialorder %v1155_v4, 0.0 }
  0x79   : > { %v551_v26 = vadd.f32 %v550_v25, %v540_v35  ;;  %v621_v51 = vsel %vm609_vm2, %v620_v10, %v1882_v38  ;;  %v629_v59 = vadd.f32 0.16666752, %v628_v29  ;;  %v1280_v0 = vpop.eup %1279  ;;  %v2572_v2 = vclamps-f32 %v1864_v15, 1.0 }
  0x7a   : > { %v630_v45 = vmul.f32 %v621_v51, %v1926_v58  ;;  %v666_v36 = vadd.f32 0.045470025, %v665_v14  ;;  %v409_v1 = vadd.f32 0.001, %v408_v43  ;;  %v2035_v4 = vsub.f32 %v433_v7, %v434_v12 }
  0x7b   : > { %vm2031_vm14 = vcmp.lt.f32.partialorder %v2572_v2, 0.0  ;;  %v552_v31 = vmul.f32 2.0, %v551_v26  ;;  %v553_v49 = vsub.f32 1.5707964, %v551_v26  ;;  %v590_v23 = vmul.f32 %v589_v5, %v588_v13 }
  0x7c   : > { %v656_v16 = vmul.f32 %v1280_v0, %v1963_v52  ;;  %v631_v25 = vmul.f32 %v630_v45, %v629_v59  ;;  %v667_v57 = vmul.f32 %v666_v36, %v1963_v52  ;;  %1281 = vrsqrt.f32 %v409_v1 }
  0x7d   : > { %v436_v15 = vmul.f32 %v1933_v62, %v1775_v32  ;;  %v554_v58 = vsel %vm528_vm0, %v552_v31, %v553_v49  ;;  %v591_v17 = vadd.f32 %v590_v23, %v580_v11  ;;  %v437_v43 = vmul.f32 %v1914_v34, %v1781_v37 }
  0x7e   : > { %v658_v7 = vsel %vm657_vm10, %v1963_v52, %v656_v16  ;;  %v556_v12 = vsub.f32 3.1415927, %v554_v58  ;;  %v632_v29 = vadd.f32 %v631_v25, %v621_v51  ;;  %v668_v10 = vadd.f32 0.074953005, %v667_v57 }
  0x7f   : > { %v661_v13 = vsel %vm659_vm11, %v660_v22, %v658_v7  ;;  %v592_v14 = vmul.f32 2.0, %v591_v17  ;;  %v593_v26 = vsub.f32 1.5707964, %v591_v17  ;;  %v2053_v11 = vsub.f32 %v436_v15, %v437_v43 }
  0x80   : > { %v662_v50 = vsel %vm650_vm5, %v661_v13, %v1911_v55  ;;  %v557_v5 = vsel %vm1995_vm12, %v556_v12, %v554_v58  ;;  %v633_v59 = vmul.f32 2.0, %v632_v29  ;;  %v634_v0 = vsub.f32 1.5707964, %v632_v29 }
  0x81   : > { %v669_v51 = vmul.f32 %v668_v10, %v1963_v52  ;;  %v558_v45 = vmul.f32 %v1771_v27, %v557_v5  ;;  %v594_v22 = vsel %vm568_vm1, %v592_v14, %v593_v26  ;;  %v671_v2 = vmul.f32 %v662_v50, %v1963_v52 }
  0x82   : > { %v439_v36 = vmul.f32 %v1914_v34, %v1778_v33  ;;  %v596_v1 = vsub.f32 3.1415927, %v594_v22  ;;  %v635_v31 = vsel %vm609_vm2, %v633_v59, %v634_v0  ;;  %v2575_v49 = vclamps-f32 %v1878_v28, 1.0 }
  0x83   : > { %v670_v61 = vadd.f32 0.16666752, %v669_v51  ;;  %v440_v20 = vmul.f32 %v1917_v56, %v1775_v32  ;;  %559 = vst [vmem:[%s2075_s7] sm:$0xff] %v558_v45  ;;  %v637_v52 = vsub.f32 3.1415927, %v635_v31  ;;  %v442_v16 = vmul.f32 %v2035_v4, %v2035_v4 }
  0x84   : > { %vm2068_vm15 = vcmp.lt.f32.partialorder %v2575_v49, 0.0  ;;  %v443_v38 = vmul.f32 %v2053_v11, %v2053_v11  ;;  %v414_v28 = vmul.f32 %v1810_v48, %v1787_v40  ;;  %v597_v25 = vsel %vm2021_vm13, %v596_v1, %v594_v22 }
  0x85   : > { %v672_v57 = vmul.f32 %v671_v2, %v670_v61  ;;  %v2086_v15 = vsub.f32 %v439_v36, %v440_v20  ;;  %v415_v58 = vmul.f32 %v1807_v47, %v1790_v41  ;;  %v598_v17 = vmul.f32 %v597_v25, %v1793_v9 }
  0x86   : > { %v638_v7 = vsel %vm2031_vm14, %v637_v52, %v635_v31  ;;  %v444_v43 = vadd.f32 %v443_v38, %v442_v16  ;;  %v417_v12 = vmul.f32 %v1804_v46, %v1790_v41  ;;  %v1282_v29 = vpop.eup %1281  ;;  %v418_v59 = vmul.f32 %v1810_v48, %v1784_v39 }
  0x87   : > { %v639_v42 = vmul.f32 %v638_v7, %v1793_v9  ;;  %v673_v13 = vadd.f32 %v672_v57, %v662_v50  ;;  %v445_v10 = vmul.f32 %v2086_v15, %v2086_v15  ;;  %v2098_v14 = vsub.f32 %v414_v28, %v415_v58  ;;  %1156 = vst [vmem:[%s2075_s7 + $0x8] sm:$0xff] %v598_v17 }
  0x88   : > { %v2102_v26 = vmul.f32 %v1282_v29, %v1935_v18  ;;  %v2105_v35 = vmul.f32 %v1282_v29, %v1949_v24  ;;  %v2108_v5 = vmul.f32 %v1282_v29, %v1965_v30  ;;  %v420_v45 = vmul.f32 %v1807_v47, %v1784_v39 }
  0x89   : > { %1158 = vst [vmem:[%s2075_s7 + $0x10] sm:$0xff] %v639_v42  ;;  %v674_v50 = vmul.f32 2.0, %v673_v13  ;;  %v675_v0 = vsub.f32 1.5707964, %v673_v13  ;;  %v446_v51 = vadd.f32 %v445_v10, %v444_v43  ;;  %v2122_v22 = vsub.f32 %v417_v12, %v418_v59 }
  0x8a   : > { %v688_v18 = vmul.f32 %v2102_v26, %v1914_v34  ;;  %v689_v24 = vmul.f32 %v2105_v35, %v1917_v56  ;;  %v691_v30 = vmul.f32 %v2108_v5, %v1933_v62  ;;  %v421_v1 = vmul.f32 %v1804_v46, %v1787_v40 }
  0x8b   : > { %v676_v2 = vsel %vm650_vm5, %v674_v50, %v675_v0  ;;  %v447_v36 = vadd.f32 0.001, %v446_v51  ;;  %v423_v31 = vmul.f32 %v2098_v14, %v2098_v14  ;;  %v424_v56 = vmul.f32 %v2122_v22, %v2122_v22 }
  0x8c   : > { %v678_v34 = vsub.f32 3.1415927, %v676_v2  ;;  %v690_v61 = vadd.f32 %v689_v24, %v688_v18  ;;  %v452_v62 = vmul.f32 %v1823_v21, %v1807_v47  ;;  %v2141_v55 = vsub.f32 %v420_v45, %v421_v1 }
  0x8d   : > { %1283 = vrsqrt.f32 %v447_v36  ;;  %v453_v49 = vmul.f32 %v1820_v54, %v1810_v48  ;;  %v455_v20 = vmul.f32 %v1817_v53, %v1810_v48  ;;  %v425_v38 = vadd.f32 %v424_v56, %v423_v31 }
  0x8e   : > { %v679_v52 = vsel %vm2068_vm15, %v678_v34, %v676_v2  ;;  %v2149_v16 = vadd.f32 %v691_v30, %v690_v61  ;;  %v456_v28 = vmul.f32 %v1823_v21, %v1804_v46  ;;  %v426_v57 = vmul.f32 %v2141_v55, %v2141_v55 }
  0x8f   : > { %v680_v25 = vmul.f32 %v1771_v27, %v679_v52  ;;  %v2156_v58 = vsub.f32 %v452_v62, %v453_v49  ;;  %v458_v17 = vmul.f32 %v1820_v54, %v1804_v46  ;;  %v459_v21 = vmul.f32 %v1817_v53, %v1807_v47 }
  0x90   : > { %v2168_v48 = vsub.f32 %v455_v20, %v456_v28  ;;  %1285 = vrsqrt.f32 %v1889_v44  ;;  %v427_v46 = vadd.f32 %v426_v57, %v425_v38  ;;  %v490_v23 = vmul.f32 %v1848_v6, %v1787_v40 }
  0x91   : > { %1160 = vst [vmem:[%s2075_s7 + $0x18] sm:$0xff] %v680_v25  ;;  %v2182_v54 = vmul.f32 %v2156_v58, %v2156_v58  ;;  %v491_v47 = vmul.f32 %v1845_v63, %v1790_v41  ;;  %v2188_v53 = vsub.f32 %v458_v17, %v459_v21  ;;  %v2194_v7 = vmul.f32 %v1842_v60, %v1790_v41  ;;  %s1480_s7 = smov [#allocation6]  }
  0x92   : > { %v462_v44 = vmul.f32 %v2168_v48, %v2168_v48  ;;  %v494_v43 = vmul.f32 %v1848_v6, %v1784_v39  ;;  %s1337_s15 = sshll.u32 %s1480_s7, 4  ;;  %s1338_s15 = int_to_ptr.vmem [resolvable:$false] %s1337_s15 }
  0x93   : > { %s1339_s6 = scalar_lea.vmem %s1338_s15, 1024  ;;  %p1340_p5 = scmp.lt.s32.totalorder %s2138_s9, %s1338_s15 }
  0x94   : > { %p1341_p13 = scmp.lt.s32.totalorder %s1339_s6, %s1333_s4 }
  0x96   : > { %p1342_p2 = por %p1341_p13, %p1340_p5 }
  0x98   : > { %p1343_p4 = pnand %p1342_p2, %p1336_p0 }
  0x9a   : > { %1346 = shalt.err (!%p1343_p4)
}
  0x9b   : > { %s1347_s18 = scalar_lea.hbm %s2164_s8, 512  ;;  %s1351_s21 = scalar_lea.hbm %s2557_s2, 1024 }
  0x9c   : > { %p1348_p6 = scmp.ne.s32.totalorder %s2164_s8, %s1347_s18  ;;  %p1352_p12 = scmp.lt.u32.totalorder %s2164_s8, %s2557_s2 }
  0x9d   : > { %p1353_p1 = scmp.lt.u32.totalorder %s1351_s21, %s1347_s18  ;;  %p1355_p8 = scmp.lt.u32.totalorder %s1347_s18, %s2164_s8 }
  0x9e   : > { %p1349_p7 = pnand %p1348_p6, %p2578_p9 }
  0x9f   : > { %p1354_p3 = por %p1353_p1, %p1352_p12 }
  0xa0   : > { %p1350_p10 = pneg %p1349_p7 }
  0xa1   : > { %p1356_p11 = por %p1355_p8, %p1354_p3 }
  0xa3   : > { %p1357_p0 = pnand %p1356_p11, %p1350_p10 }
  0xa5   : > { %1360 = shalt.err (!%p1357_p0)
}
  0xa6   : > { %s1481_s4 = smov 128   ;;  %s1482_s6 = smov 8   ;;  %v428_v6 = vadd.f32 0.001, %v427_v46  ;;  %v2227_v12 = vsub.f32 %v490_v23, %v491_v47  ;;  %v496_v29 = vmul.f32 %v1845_v63, %v1784_v39  ;;  %v497_v42 = vmul.f32 %v1842_v60, %v1787_v40 }
  0xa7   : > { %1188 = dma.vmem_to_hbm [thread:$0]  (%p2578_p9), %s2138_s9, 512, %s2164_s8, %s2200_s30, %s1481_s4, %s1481_s4, %s1482_s6  }
  0xa8   : > { %s1361_s18 = scalar_lea.vmem %s2166_s5, 512  ;;  %s1483_s10 = smov [#allocation8]  }
  0xa9   : > { %p1362_p5 = scmp.ne.s32.totalorder %s2166_s5, %s1361_s18  ;;  %s1365_s11 = sshll.u32 %s1483_s10, 4  ;;  %s1366_s11 = int_to_ptr.vmem [resolvable:$false] %s1365_s11 }
  0xaa   : > { %s1367_s21 = scalar_lea.vmem %s1366_s11, 1024  ;;  %p1368_p4 = scmp.lt.s32.totalorder %s2166_s5, %s1366_s11 }
  0xab   : > { %p1363_p13 = pnand %p1362_p5, %p2578_p9  ;;  %p1369_p6 = scmp.lt.s32.totalorder %s1367_s21, %s1361_s18 }
  0xad   : > { %p1364_p2 = pneg %p1363_p13  ;;  %p1370_p7 = por %p1369_p6, %p1368_p4 }
  0xaf   : > { %p1371_p10 = pnand %p1370_p7, %p1364_p2 }
  0xb1   : > { %1374 = shalt.err (!%p1371_p10)
}
  0xb2   : > { %s1375_s9 = scalar_lea.hbm %s2177_s23, 512  ;;  %s1379_s15 = scalar_lea.hbm %s2558_s3, 1024 }
  0xb3   : > { %p1376_p12 = scmp.ne.s32.totalorder %s2177_s23, %s1375_s9  ;;  %p1380_p8 = scmp.lt.u32.totalorder %s2177_s23, %s2558_s3 }
  0xb4   : > { %p1381_p11 = scmp.lt.u32.totalorder %s1379_s15, %s1375_s9  ;;  %p1383_p5 = scmp.lt.u32.totalorder %s1375_s9, %s2177_s23 }
  0xb5   : > { %p1377_p1 = pnand %p1376_p12, %p2578_p9 }
  0xb6   : > { %p1382_p0 = por %p1381_p11, %p1380_p8 }
  0xb7   : > { %p1378_p3 = pneg %p1377_p1 }
  0xb8   : > { %p1384_p13 = por %p1383_p5, %p1382_p0 }
  0xba   : > { %p1385_p2 = pnand %p1384_p13, %p1378_p3 }
  0xbc   : > { %1388 = shalt.err (!%p1385_p2)
}
  0xbd   : > { %1189 = dma.vmem_to_hbm [thread:$0]  (%p2578_p9), %s2166_s5, 512, %s2177_s23, %s2200_s30, %s1481_s4, %s1481_s4, %s1482_s6   ;;  %v463_v60 = vadd.f32 %v462_v44, %v2182_v54  ;;  %v464_v63 = vmul.f32 %v2188_v53, %v2188_v53  ;;  %v2262_v13 = vsub.f32 %v2194_v7, %v494_v43  ;;  %1287 = vrsqrt.f32 %v428_v6  ;;  %v1284_v51 = vpop.eup %1283 }
  0xbe   : > { %v2264_v10 = vsub.f32 %v496_v29, %v497_v42  ;;  %v499_v59 = vmul.f32 %v2227_v12, %v2227_v12  ;;  %v449_v18 = vmul.f32 %v1284_v51, %v2035_v4  ;;  %v450_v24 = vmul.f32 %v1284_v51, %v2053_v11  ;;  %v1286_v1 = vpop.eup %1285  ;;  %s2500_s30 = scalar_lea.hbm %s2556_s1, %s2136_s28  ;;  %s879_s18 = scalar_lea.sflag [#allocation4], %s1623_s22 }
  0xbf   : > { %v465_v50 = vadd.f32 %v464_v63, %v463_v60  ;;  %v500_v0 = vmul.f32 %v2262_v13, %v2262_v13  ;;  %v451_v30 = vmul.f32 %v1284_v51, %v2086_v15  ;;  %v2279_v56 = vmul.f32 %v1286_v1, %v1745_v8  ;;  %s1484_s9 = smov [#allocation5]  }
  0xc0   : > { %v502_v45 = vmul.f32 %v2264_v10, %v2264_v10  ;;  %v683_v31 = vmul.f32 %v449_v18, %v2102_v26  ;;  %v684_v34 = vmul.f32 %v450_v24, %v2105_v35  ;;  %v2282_v62 = vmul.f32 %v1286_v1, %v1752_v19  ;;  %s1393_s8 = sshll.u32 %s1484_s9, 4  ;;  %s1394_s8 = int_to_ptr.vmem [resolvable:$false] %s1393_s8 }
  0xc1   : > { %v466_v2 = vadd.f32 0.001, %v465_v50  ;;  %v501_v36 = vadd.f32 %v500_v0, %v499_v59  ;;  %v686_v61 = vmul.f32 %v451_v30, %v2108_v5  ;;  %v2285_v4 = vmul.f32 %v1286_v1, %v1757_v3  ;;  %s1395_s7 = scalar_lea.vmem %s1394_s8, 1024 }
  0xc2   : > { %v685_v15 = vadd.f32 %v684_v34, %v683_v31  ;;  %v471_v49 = vmul.f32 %v2282_v62, %v1790_v41  ;;  %v475_v8 = vmul.f32 %v2279_v56, %v1790_v41  ;;  %v477_v19 = vmul.f32 %v2279_v56, %v1787_v40 }
  0xc3   : > { %1289 = vrsqrt.f32 %v466_v2  ;;  %v503_v11 = vadd.f32 %v502_v45, %v501_v36  ;;  %v472_v20 = vmul.f32 %v2285_v4, %v1787_v40  ;;  %v474_v52 = vmul.f32 %v2285_v4, %v1784_v39 }
  0xc4   : > { %v2295_v38 = vadd.f32 %v686_v61, %v685_v15  ;;  %v478_v3 = vmul.f32 %v2282_v62, %v1784_v39  ;;  %vm726_vm8 = vcmp.lt.f32.partialorder %v2149_v16, 0.0 }
  0xc5   : > { %v504_v28 = vadd.f32 0.001, %v503_v11  ;;  %v2301_v57 = vsub.f32 %v471_v49, %v472_v20  ;;  %v2303_v17 = vsub.f32 %v474_v52, %v475_v8 }
  0xc6   : > { %v1161_v21 = vclamps-f32 %v2295_v38, 1.0  ;;  %v2315_v47 = vsub.f32 %v477_v19, %v478_v3 }
  0xc7   : > { %v1288_v25 = vpop.eup %1287  ;;  %v480_v44 = vmul.f32 %v2301_v57, %v2301_v57  ;;  %1291 = vrsqrt.f32 %v504_v28 }
  0xc8   : > { %v2307_v46 = vmul.f32 %v1288_v25, %v2098_v14  ;;  %v2310_v54 = vmul.f32 %v1288_v25, %v2122_v22  ;;  %v2313_v23 = vmul.f32 %v1288_v25, %v2141_v55  ;;  %v2321_v7 = vand.u32 2147483647, %v1161_v21 }
  0xc9   : > { %v481_v55 = vmul.f32 %v2303_v17, %v2303_v17  ;;  %vm723_vm7 = vcmp.lt.f32.partialorder %v1161_v21, 0.0 }
  0xca   : > { %v731_v14 = vmul.f32 %v2307_v46, %v2102_v26  ;;  %v732_v22 = vmul.f32 %v2310_v54, %v2105_v35  ;;  %v734_v43 = vmul.f32 %v2313_v23, %v2108_v5  ;;  %v697_v29 = vsub.f32 1.0, %v2321_v7 }
  0xcb   : > { %v699_v42 = vmul.f32 %v2321_v7, %v2321_v7  ;;  %vm696_vm0 = vcmp.gt.f32.partialorder %v2321_v7, 0.5  ;;  %v482_v50 = vadd.f32 %v481_v55, %v480_v44 }
  0xcc   : > { %v733_v60 = vadd.f32 %v732_v22, %v731_v14  ;;  %v698_v59 = vmul.f32 0.5, %v697_v29 }
  0xcd   : > { %v1290_v6 = vpop.eup %1289 }
  0xce   : > { %v2336_v26 = vmul.f32 %v1290_v6, %v2156_v58  ;;  %v2339_v35 = vmul.f32 %v1290_v6, %v2168_v48  ;;  %v2342_v63 = vmul.f32 %v1290_v6, %v2188_v53  ;;  %v2344_v5 = vadd.f32 %v734_v43, %v733_v60 }
  0xcf   : > { %v483_v58 = vmul.f32 %v2315_v47, %v2315_v47  ;;  %v700_v48 = vsel %vm696_vm0, %v698_v59, %v699_v42 }
  0xd0   : > { %v780_v0 = vmul.f32 %v2336_v26, %v2307_v46  ;;  %v781_v51 = vmul.f32 %v2339_v35, %v2310_v54  ;;  %v1162_v45 = vclamps-f32 %v2344_v5, 1.0  ;;  %1293 = vrsqrt.f32 %v700_v48 }
  0xd1   : > { %v783_v53 = vmul.f32 %v2342_v63, %v2313_v23  ;;  %v709_v18 = vmul.f32 0.0421632, %v700_v48  ;;  %v1292_v30 = vpop.eup %1291  ;;  %v484_v36 = vadd.f32 %v483_v58, %v482_v50  ;;  %vm703_vm2 = vcmp.eq.f32.partialorder %v700_v48, inf }
  0xd2   : > { %v2359_v24 = vand.u32 2147483647, %v1162_v45  ;;  %v782_v2 = vadd.f32 %v781_v51, %v780_v0  ;;  %v506_v15 = vmul.f32 %v1292_v30, %v2227_v12  ;;  %v507_v52 = vmul.f32 %v1292_v30, %v2262_v13 }
  0xd3   : > { %v710_v1 = vadd.f32 0.024181312, %v709_v18  ;;  %v485_v11 = vadd.f32 0.001, %v484_v36  ;;  %v508_v8 = vmul.f32 %v1292_v30, %v2264_v10  ;;  %vm705_vm3 = vcmp.eq.f32.partialorder %v700_v48, 0.0 }
  0xd4   : > { %v745_v31 = vsub.f32 1.0, %v2359_v24  ;;  %v747_v34 = vmul.f32 %v2359_v24, %v2359_v24  ;;  %vm744_vm1 = vcmp.gt.f32.partialorder %v2359_v24, 0.5  ;;  %v2365_v61 = vadd.f32 %v783_v53, %v782_v2 }
  0xd5   : > { %v711_v49 = vmul.f32 %v710_v1, %v700_v48  ;;  %1295 = vrsqrt.f32 %v485_v11  ;;  %v834_v3 = vmul.f32 %v506_v15, %v2279_v56  ;;  %v835_v44 = vmul.f32 %v507_v52, %v2282_v62 }
  0xd6   : > { %v746_v20 = vmul.f32 0.5, %v745_v31  ;;  %v1164_v19 = vclamps-f32 %v2365_v61, 1.0  ;;  %v837_v12 = vmul.f32 %v508_v8, %v2285_v4  ;;  %v706_v56 = vand.u32 2147483648, %v700_v48 }
  0xd7   : > { %v712_v28 = vadd.f32 0.045470025, %v711_v49  ;;  %v836_v55 = vadd.f32 %v835_v44, %v834_v3  ;;  %v736_v36 = vmul.f32 %v2307_v46, %v1775_v32  ;;  %v1149_v44 = vld [vmem:[%s1627_s29 + $0xb0] sm:$0xff]  ;;  %vm771_vm11 = vcmp.lt.f32.partialorder %v1162_v45, 0.0  ;;  %s2467_s29 = scalar_lea.vmem [#allocation5], %s1766_s24 }
  0xd8   : > { %v2374_v25 = vsel %vm744_vm1, %v746_v20, %v747_v34  ;;  %v2382_v10 = vand.u32 2147483647, %v1164_v19  ;;  %vm820_vm14 = vcmp.lt.f32.partialorder %v1164_v19, 0.0  ;;  %s903_s24 = sshll.u32 %s2467_s29, 4  ;;  %s2493_s24 = int_to_ptr.vmem [resolvable:$true] %s903_s24 }
  0xd9   : > { %1297 = vrsqrt.f32 %v2374_v25  ;;  %v713_v14 = vmul.f32 %v712_v28, %v700_v48  ;;  %v757_v13 = vmul.f32 0.0421632, %v2374_v25  ;;  %v2387_v42 = vadd.f32 %v837_v12, %v836_v55  ;;  %s1389_s21 = scalar_lea.vmem %s2493_s24, 512  ;;  %p1396_p10 = scmp.lt.s32.totalorder %s2493_s24, %s1394_s8 }
  0xda   : > { %v1294_v22 = vpop.eup %1293  ;;  %v794_v62 = vsub.f32 1.0, %v2382_v10  ;;  %v796_v4 = vmul.f32 %v2382_v10, %v2382_v10  ;;  %vm793_vm4 = vcmp.gt.f32.partialorder %v2382_v10, 0.5  ;;  %vm751_vm5 = vcmp.eq.f32.partialorder %v2374_v25, inf  ;;  %p1390_p4 = scmp.ne.s32.totalorder %s2493_s24, %s1389_s21  ;;  %p1397_p12 = scmp.lt.s32.totalorder %s1395_s7, %s1389_s21 }
  0xdb   : > { %v702_v43 = vmul.f32 %v1294_v22, %v700_v48  ;;  %v714_v6 = vadd.f32 0.074953005, %v713_v14  ;;  %v758_v29 = vadd.f32 0.024181312, %v757_v13  ;;  %vm753_vm6 = vcmp.eq.f32.partialorder %v2374_v25, 0.0 }
  0xdc   : > { %v795_v51 = vmul.f32 0.5, %v794_v62  ;;  %v737_v14 = vmul.f32 %v2310_v54, %v1778_v33  ;;  %v295_v62 = vmul.f32 %v1149_v44, %v1771_v27  ;;  %v739_v27 = vmul.f32 %v2313_v23, %v1781_v37  ;;  %p1391_p6 = pnand %p1390_p4, %p2578_p9  ;;  %p1398_p1 = por %p1397_p12, %p1396_p10 }
  0xdd   : > { %v704_v60 = vsel %vm703_vm2, %v700_v48, %v702_v43  ;;  %v715_v59 = vmul.f32 %v714_v6, %v700_v48  ;;  %v759_v50 = vmul.f32 %v758_v29, %v2374_v25 }
  0xde   : > { %v707_v0 = vsel %vm705_vm3, %v706_v56, %v704_v60  ;;  %v2398_v1 = vsel %vm793_vm4, %v795_v51, %v796_v4  ;;  %vm872_vm3 = vcmp.lt.f32.partialorder %v2387_v42, 0.0  ;;  %p1392_p7 = pneg %p1391_p6 }
  0xdf   : > { %v708_v58 = vsel %vm696_vm0, %v707_v0, %v2321_v7  ;;  %v716_v53 = vadd.f32 0.16666752, %v715_v59  ;;  %v760_v18 = vadd.f32 0.045470025, %v759_v50  ;;  %v1296_v30 = vpop.eup %1295  ;;  %1299 = vrsqrt.f32 %v2398_v1 }
  0xe0   : > { %v717_v2 = vmul.f32 %v708_v58, %v700_v48  ;;  %v754_v48 = vand.u32 2147483648, %v2374_v25  ;;  %v806_v49 = vmul.f32 0.0421632, %v2398_v1  ;;  %v487_v32 = vmul.f32 %v1296_v30, %v2301_v57  ;;  %p1399_p3 = pnand %p1398_p1, %p1392_p7 }
  0xe1   : > { %v761_v31 = vmul.f32 %v760_v18, %v2374_v25  ;;  %v488_v3 = vmul.f32 %v1296_v30, %v2303_v17  ;;  %v489_v28 = vmul.f32 %v1296_v30, %v2315_v47  ;;  %v738_v59 = vadd.f32 %v737_v14, %v736_v36 }
  0xe2   : > { %v718_v11 = vmul.f32 %v717_v2, %v716_v53  ;;  %v807_v13 = vadd.f32 0.024181312, %v806_v49  ;;  %v829_v22 = vmul.f32 %v506_v15, %v487_v32  ;;  %vm800_vm9 = vcmp.eq.f32.partialorder %v2398_v1, inf }
  0xe3   : > { %v1298_v34 = vpop.eup %1297  ;;  %v762_v20 = vadd.f32 0.074953005, %v761_v31  ;;  %v830_v55 = vmul.f32 %v507_v52, %v488_v3  ;;  %v832_v43 = vmul.f32 %v508_v8, %v489_v28  ;;  %vm802_vm10 = vcmp.eq.f32.partialorder %v2398_v1, 0.0 }
  0xe4   : > { %v750_v46 = vmul.f32 %v1298_v34, %v2374_v25  ;;  %v719_v12 = vadd.f32 %v718_v11, %v708_v58  ;;  %v808_v47 = vmul.f32 %v807_v13, %v2398_v1  ;;  %v803_v21 = vand.u32 2147483648, %v2398_v1 }
  0xe5   : > { %v763_v57 = vmul.f32 %v762_v20, %v2374_v25  ;;  %v831_v15 = vadd.f32 %v830_v55, %v829_v22  ;;  %v740_v18 = vadd.f32 %v739_v27, %v738_v59  ;;  %v785_v30 = vmul.f32 %v2336_v26, %v1784_v39 }
  0xe6   : > { %v752_v56 = vsel %vm751_vm5, %v2374_v25, %v750_v46  ;;  %v720_v6 = vmul.f32 2.0, %v719_v12  ;;  %v721_v29 = vsub.f32 1.5707964, %v719_v12  ;;  %v809_v8 = vadd.f32 0.045470025, %v808_v47 }
  0xe7   : > { %v755_v17 = vsel %vm753_vm6, %v754_v48, %v752_v56  ;;  %v764_v54 = vadd.f32 0.16666752, %v763_v57  ;;  %v2431_v50 = vadd.f32 %v832_v43, %v831_v15  ;;  %v786_v2 = vmul.f32 %v2339_v35, %v1787_v40 }
  0xe8   : > { %v756_v33 = vsel %vm744_vm1, %v755_v17, %v2359_v24  ;;  %v722_v4 = vsel %vm696_vm0, %v720_v6, %v721_v29  ;;  %v810_v7 = vmul.f32 %v809_v8, %v2398_v1  ;;  %vm774_vm13 = vcmp.lt.f32.partialorder %v740_v18, 0.0 }
  0xe9   : > { %v765_v52 = vmul.f32 %v756_v33, %v2374_v25  ;;  %v724_v60 = vsub.f32 3.1415927, %v722_v4  ;;  %v1300_v51 = vpop.eup %1299  ;;  %v1166_v25 = vclamps-f32 %v2431_v50, 1.0  ;;  %v787_v44 = vadd.f32 %v786_v2, %v785_v30 }
  0xea   : > { %v799_v37 = vmul.f32 %v1300_v51, %v2398_v1  ;;  %v811_v23 = vadd.f32 0.074953005, %v810_v7  ;;  %v788_v12 = vmul.f32 %v2342_v63, %v1790_v41 }
  0xeb   : > { %v766_v0 = vmul.f32 %v765_v52, %v764_v54  ;;  %v725_v38 = vsel %vm723_vm7, %v724_v60, %v722_v4  ;;  %v2446_v36 = vand.u32 2147483647, %v1166_v25  ;;  %vm869_vm2 = vcmp.lt.f32.partialorder %v1166_v25, 0.0 }
  0xec   : > { %v727_v58 = vsub.f32 0.0, %v725_v38  ;;  %v801_v48 = vsel %vm800_vm9, %v2398_v1, %v799_v37  ;;  %v812_v40 = vmul.f32 %v811_v23, %v2398_v1  ;;  %v789_v43 = vadd.f32 %v788_v12, %v787_v44 }
  0xed   : > { %v767_v53 = vadd.f32 %v766_v0, %v756_v33  ;;  %v804_v39 = vsel %vm802_vm10, %v803_v21, %v801_v48  ;;  %v843_v35 = vsub.f32 1.0, %v2446_v36  ;;  %v845_v32 = vmul.f32 %v2446_v36, %v2446_v36 }
  0xee   : > { %v728_v31 = vsel %vm726_vm8, %v727_v58, %v725_v38  ;;  %v805_v16 = vsel %vm793_vm4, %v804_v39, %v2382_v10  ;;  %v813_v45 = vadd.f32 0.16666752, %v812_v40  ;;  %vm842_vm12 = vcmp.gt.f32.partialorder %v2446_v36, 0.5 }
  0xef   : > { %v768_v34 = vmul.f32 2.0, %v767_v53  ;;  %v769_v11 = vsub.f32 1.5707964, %v767_v53  ;;  %v729_v49 = vmul.f32 %v728_v31, %v295_v62  ;;  %v814_v46 = vmul.f32 %v805_v16, %v2398_v1 }
  0xf0   : > { %v844_v24 = vmul.f32 0.5, %v843_v35  ;;  %vm823_vm15 = vcmp.lt.f32.partialorder %v789_v43, 0.0 }
  0xf1   : > { %v770_v26 = vsel %vm744_vm1, %v768_v34, %v769_v11  ;;  %730 = vst [vmem:[%s2467_s29] sm:$0xff] %v729_v49  ;;  %v815_v3 = vmul.f32 %v814_v46, %v813_v45 }
  0xf2   : > { %v772_v5 = vsub.f32 3.1415927, %v770_v26  ;;  %v846_v14 = vsel %vm842_vm12, %v844_v24, %v845_v32 }
  0xf3   : > { %v816_v13 = vadd.f32 %v815_v3, %v805_v16  ;;  %1301 = vrsqrt.f32 %v846_v14  ;;  %v855_v56 = vmul.f32 0.0421632, %v846_v14  ;;  %vm849_vm0 = vcmp.eq.f32.partialorder %v846_v14, inf }
  0xf4   : > { %v773_v20 = vsel %vm771_vm11, %v772_v5, %v770_v26  ;;  %v852_v4 = vand.u32 2147483648, %v846_v14  ;;  %vm851_vm1 = vcmp.eq.f32.partialorder %v846_v14, 0.0 }
  0xf5   : > { %v775_v28 = vsub.f32 0.0, %v773_v20  ;;  %v817_v57 = vmul.f32 2.0, %v816_v13  ;;  %v818_v55 = vsub.f32 1.5707964, %v816_v13  ;;  %v856_v6 = vadd.f32 0.024181312, %v855_v56 }
  0xf7   : > { %v776_v22 = vsel %vm774_vm13, %v775_v28, %v773_v20  ;;  %v819_v29 = vsel %vm793_vm4, %v817_v57, %v818_v55  ;;  %v857_v63 = vmul.f32 %v856_v6, %v846_v14 }
  0xf8   : > { %v777_v1 = vmul.f32 %v776_v22, %v1793_v9  ;;  %v821_v41 = vsub.f32 3.1415927, %v819_v29 }
  0xf9   : > { %v858_v47 = vadd.f32 0.045470025, %v857_v63 }
  0xfa   : > { %1163 = vst [vmem:[%s2467_s29 + $0x8] sm:$0xff] %v777_v1  ;;  %v822_v17 = vsel %vm820_vm14, %v821_v41, %v819_v29 }
  0xfb   : > { %v824_v62 = vsub.f32 0.0, %v822_v17  ;;  %v859_v33 = vmul.f32 %v858_v47, %v846_v14 }
  0xfd   : > { %v1302_v54 = vpop.eup %1301  ;;  %v825_v15 = vsel %vm823_vm15, %v824_v62, %v822_v17  ;;  %v860_v10 = vadd.f32 0.074953005, %v859_v33 }
  0xfe   : > { %v826_v52 = vmul.f32 %v825_v15, %v1793_v9  ;;  %v848_v8 = vmul.f32 %v1302_v54, %v846_v14 }
  0xff   : > { %v861_v19 = vmul.f32 %v860_v10, %v846_v14 }
 0x100   : > { %1165 = vst [vmem:[%s2467_s29 + $0x10] sm:$0xff] %v826_v52  ;;  %v850_v61 = vsel %vm849_vm0, %v846_v14, %v848_v8 }
 0x101   : > { %v853_v60 = vsel %vm851_vm1, %v852_v4, %v850_v61  ;;  %v862_v27 = vadd.f32 0.16666752, %v861_v19 }
 0x102   : > { %v854_v59 = vsel %vm842_vm12, %v853_v60, %v2446_v36 }
 0x103   : > { %v863_v0 = vmul.f32 %v854_v59, %v846_v14 }
 0x105   : > { %v864_v7 = vmul.f32 %v863_v0, %v862_v27 }
 0x107   : > { %v865_v51 = vadd.f32 %v864_v7, %v854_v59 }
 0x109   : > { %v866_v38 = vmul.f32 2.0, %v865_v51  ;;  %v867_v21 = vsub.f32 1.5707964, %v865_v51 }
 0x10b   : > { %v868_v58 = vsel %vm842_vm12, %v866_v38, %v867_v21 }
 0x10c   : > { %v870_v53 = vsub.f32 3.1415927, %v868_v58 }
 0x10e   : > { %v871_v37 = vsel %vm869_vm2, %v870_v53, %v868_v58 }
 0x10f   : > { %v873_v23 = vsub.f32 0.0, %v871_v37 }
 0x111   : > { %v874_v18 = vsel %vm872_vm3, %v873_v23, %v871_v37 }
 0x112   : > { %v875_v30 = vmul.f32 %v874_v18, %v1793_v9 }
 0x114   : > { %1167 = vst [vmem:[%s2467_s29 + $0x18] sm:$0xff] %v875_v30 }
 0x115   : > { %1402 = shalt.err (!%p1399_p3)
}
 0x116   : > { %s1403_s28 = scalar_lea.hbm %s2500_s30, 512  ;;  %s1407_s11 = scalar_lea.hbm %s2556_s1, 1024 }
 0x117   : > { %p1404_p8 = scmp.ne.s32.totalorder %s2500_s30, %s1403_s28  ;;  %p1408_p5 = scmp.lt.u32.totalorder %s2500_s30, %s2556_s1 }
 0x118   : > { %p1409_p13 = scmp.lt.u32.totalorder %s1407_s11, %s1403_s28  ;;  %p1411_p4 = scmp.lt.u32.totalorder %s1403_s28, %s2500_s30 }
 0x119   : > { %p1405_p11 = pnand %p1404_p8, %p2578_p9 }
 0x11a   : > { %p1410_p2 = por %p1409_p13, %p1408_p5 }
 0x11b   : > { %p1406_p0 = pneg %p1405_p11 }
 0x11c   : > { %p1412_p6 = por %p1411_p4, %p1410_p2 }
 0x11e   : > { %p1413_p7 = pnand %p1412_p6, %p1406_p0 }
 0x120   : > { %1416 = shalt.err (!%p1413_p7)
}
 0x121   : > { %1187 = dma.vmem_to_hbm [thread:$0]  (%p2578_p9), %s2493_s24, 512, %s2500_s30, %s879_s18, %s1481_s4, %s1481_s4, %s1482_s6  }
 0x122 PF: > { %s952_s23 = sand.u32 1, %s1455_s12   ;;  %p2579_p10 = scmp.ne.s32.totalorder %s2565_s27, 0 }
 0x123   : > { %p2580_p12 = scmp.ge.s32.totalorder %s1475_s17, 2  ;;  %s953_s21 = scalar_lea.sflag [#allocation4], %s952_s23 }
 0x125   : > { %p1198_p1 = pnand %p2580_p12, %p2579_p10 }
 0x127   : > { %1446 = dma.done.wait (!%p1198_p1), %s953_s21, 512  }
 0x128   : > { %1448 = vsyncadd (!%p1198_p1), %s953_s21, 4294966784  ;;  %s961_s25 = sand.u32 1, %s1120_s19  }
 0x129   : > { %s962_s9 = scalar_lea.sflag [#allocation7], %s961_s25 }
 0x12a   : > { %1450 = dma.done.wait (!%p1198_p1), %s962_s9, 1024  }
 0x12b   : > { %1452 = vsyncadd (!%p1198_p1), %s962_s9, 4294966272  ;;  %s23_s17 = sadd.s32 1, %s1475_s17   ;;  %s2581_s12 = smov %s1459_s13 }
 0x12c   : > { %p20_p9 = scmp.ge.s32.totalorder %s23_s17, 4   ;;  %s2582_s13 = smov %s1463_s14 }
 0x12d   : > { %s2583_s14 = smov %s1567_s26  ;;  %s2584_s15 = smov %s1471_s16 }
 0x12e   : > { %s2585_s16 = smov %s2587_s20  ;;  %22 = sbr.rel (!%p20_p9) target bundleno = 8 (0x8), region = 133 }
 0x135   :  { %976 = vsyncpa [#allocation3], 1 }
 0x136   :  { %978 = vsyncpa [#allocation3 + $0x1], 1 }
 0x137   :  { %979 = vsyncpa [#allocation4], 1 }
 0x138   :  { %981 = vsyncpa [#allocation4 + $0x1], 1 }
 0x139   :  { %982 = vsyncpa [#allocation7], 1 }
 0x13a   :  { %984 = vsyncpa [#allocation7 + $0x1], 1 }

</bundles_post_ra>
